<compile_context>
chip_gen: v5e
topology: v5e:2x2
jax: 0.10.0
libtpu: 0.0.40
codegen_flags: <defaults>
</compile_context>

<pallas_src>
import functools
import math

import numpy as np
import jax
import jax.numpy as jnp
from jax import lax
from jax.experimental import pallas as pl
from jax.experimental.pallas import tpu as pltpu


def _bn_act(v, gamma, beta, relu, eps):
    # v: (C, M); gamma, beta: (C, 1).  PyTorch training-mode BN (biased var).
    mu = jnp.mean(v, axis=1, keepdims=True)
    var = jnp.mean(jnp.square(v - mu), axis=1, keepdims=True)
    y = (v - mu) * lax.rsqrt(var + eps) * gamma + beta
    return jnp.maximum(y, 0.0) if relu else y


def sebottle2neck_kernel(x_ref, mask_ref, w1_ref, convs_w_ref, w3_ref,
                         bn_ref, se_w1_ref, se_w2_ref, o_ref,
                         *, B, H, W, width, scale, eps=1e-5):
    HW = H * W
    TOT = B * HW
    nums = scale - 1
    cout = o_ref.shape[0]

    # ---- conv1 (1x1) + bn1 + relu: ONE bf16 matmul over all groups ---------
    x_bf = x_ref[...].astype(jnp.bfloat16)                        # (Cin, TOT)
    pre1 = jnp.dot(w1_ref[...], x_bf, preferred_element_type=jnp.float32)
    out1 = _bn_act(pre1, bn_ref[0, 0][:width * scale],
                   bn_ref[1, 0][:width * scale], True, eps)       # (w*s, TOT) f32

    # ---- hierarchical 3x3 branches: one K = 9*width matmul per branch ------
    offsets = [dh * W + dw for dh in (-1, 0, 1) for dw in (-1, 0, 1)]
    branch = []
    sp = None
    for i in range(nums):
        g = out1[i * width:(i + 1) * width, :]                    # (w, TOT)
        sp_in = g if i == 0 else sp + g
        taps = [sp_in if off == 0
                else pltpu.roll(sp_in, shift=(-off) % TOT, axis=1)
                for off in offsets]
        cat = jnp.concatenate(taps, axis=0) * mask_ref[...]       # (9w, TOT) f32
        pre = jnp.dot(convs_w_ref[i], cat.astype(jnp.bfloat16),
                      preferred_element_type=jnp.float32)         # (w, TOT)
        sp = _bn_act(pre, bn_ref[0, 1 + i][:width],
                     bn_ref[1, 1 + i][:width], True, eps)
        branch.append(sp)
    branch.append(out1[nums * width:scale * width, :])            # 'normal' passthrough

    # ---- conv3 (1x1) + bn3: ONE bf16 matmul over concatenated groups -------
    cat3 = jnp.concatenate(branch, axis=0).astype(jnp.bfloat16)   # (w*s, TOT)
    pre3 = jnp.dot(w3_ref[...], cat3, preferred_element_type=jnp.float32)
    out3 = _bn_act(pre3, bn_ref[0, 1 + nums][:cout],
                   bn_ref[1, 1 + nums][:cout], False, eps)        # (cout, TOT)

    # ---- SE: per-image global avg pool -> fc -> relu -> fc -> sigmoid ------
    y = jnp.concatenate(
        [jnp.mean(out3[:, b * HW:(b + 1) * HW], axis=1, keepdims=True)
         for b in range(B)], axis=1)                              # (cout, B)
    h1 = jnp.maximum(
        jnp.dot(se_w1_ref[...], y.astype(jnp.bfloat16),
                preferred_element_type=jnp.float32), 0.0)
    s = jax.nn.sigmoid(
        jnp.dot(se_w2_ref[...], h1.astype(jnp.bfloat16),
                preferred_element_type=jnp.float32))              # (cout, B)

    # ---- channel scale + residual (re-read from VMEM input) + final ReLU ---
    for b in range(B):
        lo = b * HW
        seg = out3[:, lo:lo + HW] * s[:, b:b + 1] + x_ref[:, lo:lo + HW]
        o_ref[:, lo:lo + HW] = jnp.maximum(seg, 0.0)


def _tap_mask(B, H, W, width):
    """Fused (9*width, B*H*W) f32 validity mask for the 3x3/s1/p1 conv taps."""
    HW = H * W
    TOT = B * HW
    pos = np.arange(TOT)
    hh = (pos // W) % H
    ww = pos % W
    rows = []
    for dh in (-1, 0, 1):
        for dw in (-1, 0, 1):
            m = ((hh + dh >= 0) & (hh + dh < H) &
                 (ww + dw >= 0) & (ww + dw < W)).astype(np.float32)
            rows.append(np.broadcast_to(m[None, :], (width, TOT)))
    return np.concatenate(rows, axis=0)


def sebottle2neck_forward(x_nchw, params, *, width, scale):
    B, Cin, H, W = x_nchw.shape
    HW = H * W
    TOT = B * HW
    nums = scale - 1
    cout = params["conv3_w"].shape[0]
    assert Cin == cout, "downsample=None requires inplanes == planes*expansion"
    assert HW % 128 == 0, "kernel assumes lane-aligned H*W (multiple of 128)"

    # NCHW -> (Cin, B*H*W): channels on sublanes, pixels on lanes (free in XLA).
    x_t = jnp.transpose(x_nchw.reshape(B, Cin, HW), (1, 0, 2)).reshape(Cin, TOT)
    mask = jnp.asarray(_tap_mask(B, H, W, width))

    inputs = (x_t, mask, params["conv1_w"], params["convs_w"],
              params["conv3_w"], params["bn_p"],
              params["se_w1"], params["se_w2"])

    def _full_spec(a):
        nd = a.ndim
        return pl.BlockSpec(a.shape, lambda i, _nd=nd: (0,) * _nd)

    flops = int(2 * TOT * Cin * width * scale                 # conv1
                + nums * 2 * TOT * (9 * width) * width        # 3x3 branches
                + 2 * TOT * width * scale * cout              # conv3
                + 4 * B * cout * max(cout // 16, 1))          # SE fcs
    bytes_accessed = int(sum(a.size * a.dtype.itemsize for a in inputs)
                         + TOT * cout * 4)
    transcendentals = int(B * cout + width * scale + nums * width + cout)

    kernel = functools.partial(sebottle2neck_kernel, B=B, H=H, W=W,
                               width=width, scale=scale)
    out = pl.pallas_call(
        kernel,
        out_shape=jax.ShapeDtypeStruct((cout, TOT), jnp.float32),
        grid=(1,),
        in_specs=[_full_spec(a) for a in inputs],
        out_specs=pl.BlockSpec((cout, TOT), lambda i: (0, 0)),
        compiler_params=pltpu.CompilerParams(
            dimension_semantics=("arbitrary",)),
        cost_estimate=pl.CostEstimate(flops=flops,
                                      transcendentals=transcendentals,
                                      bytes_accessed=bytes_accessed),
    )(*inputs)
    # (cout, B*HW) -> NCHW
    return jnp.transpose(out.reshape(cout, B, HW), (1, 0, 2)).reshape(B, cout, H, W)


def make_params(key, inplanes, planes, base_width, scale):
    width = int(math.floor(planes * (base_width / 64.0)))
    nums = 1 if scale == 1 else scale - 1
    cout = planes * 2            # expansion = 2
    reduction = 16
    ks = jax.random.split(key, 8 + 2 * nums)
    p = {}

    # conv1: PyTorch (width*scale, inplanes, 1, 1) -> (width*scale, inplanes), bf16
    p["conv1_w"] = (0.1 * jax.random.normal(
        ks[0], (width * scale, inplanes), jnp.float32)).astype(jnp.bfloat16)

    # 3x3 convs: PyTorch (width, width, 3, 3) -> fused-tap (width, 9*width), bf16
    # column index = (kh*3 + kw)*width + in_channel, matching the kernel's
    # tap-concatenation order.
    convs, gs, bs = [], [], []
    for i in range(nums):
        w = 0.1 * jax.random.normal(ks[8 + 2 * i], (width, width, 3, 3), jnp.float32)
        fused = jnp.transpose(w, (0, 2, 3, 1)).reshape(width, 9 * width)
        convs.append(fused.astype(jnp.bfloat16))
        gs.append(1.0 + 0.1 * jax.random.normal(ks[8 + 2 * i + 1], (width,), jnp.float32))
        bs.append(0.05 * (i + 1) * jnp.ones((width,), jnp.float32))
    p["convs_w"] = jnp.stack(convs)                          # (nums, width, 9*width)

    # conv3: PyTorch (cout, width*scale, 1, 1) -> (cout, width*scale), bf16
    p["conv3_w"] = (0.1 * jax.random.normal(
        ks[3], (cout, width * scale), jnp.float32)).astype(jnp.bfloat16)

    # BatchNorm params packed into ONE (2, nums+2, CP, 1) f32 buffer:
    # stage 0 = bn1 (width*scale ch), stages 1..nums = bns[i] (width ch),
    # stage nums+1 = bn3 (cout ch).  Index 0 = gamma, 1 = beta.
    bn1_g = 1.0 + 0.1 * jax.random.normal(ks[1], (width * scale,), jnp.float32)
    bn1_b = 0.1 * jax.random.normal(ks[2], (width * scale,), jnp.float32)
    bn3_g = 1.0 + 0.1 * jax.random.normal(ks[4], (cout,), jnp.float32)
    bn3_b = 0.1 * jax.random.normal(ks[5], (cout,), jnp.float32)
    CP = max(width * scale, width, cout)
    n_stage = nums + 2
    g = jnp.ones((n_stage, CP), jnp.float32)
    b = jnp.zeros((n_stage, CP), jnp.float32)
    g = g.at[0, :width * scale].set(bn1_g)
    b = b.at[0, :width * scale].set(bn1_b)
    for i in range(nums):
        g = g.at[1 + i, :width].set(gs[i])
        b = b.at[1 + i, :width].set(bs[i])
    g = g.at[1 + nums, :cout].set(bn3_g)
    b = b.at[1 + nums, :cout].set(bn3_b)
    p["bn_p"] = jnp.stack([g, b], axis=0)[..., None]         # (2, nums+2, CP, 1)

    # SE fc weights (bias=False), PyTorch Linear.weight layout (out, in), bf16
    p["se_w1"] = (0.2 * jax.random.normal(
        ks[6], (cout // reduction, cout), jnp.float32)).astype(jnp.bfloat16)
    p["se_w2"] = (0.2 * jax.random.normal(
        ks[7], (cout, cout // reduction), jnp.float32)).astype(jnp.bfloat16)
    return p, width


if __name__ == "__main__":
    # inplanes=32, planes=16, baseWidth=16, scale=4 -> width=4, nums=3,
    # output channels = 32 = inplanes (so downsample=None, residual = x).
    INPLANES, PLANES, BASE_WIDTH, SCALE = 32, 16, 16, 4
    B, H, W = 2, 16, 16

    key = jax.random.PRNGKey(0)
    kx, kp = jax.random.split(key)
    x = jax.random.normal(kx, (B, INPLANES, H, W), jnp.float32)   # NCHW, like PyTorch
    params, width = make_params(kp, INPLANES, PLANES, BASE_WIDTH, SCALE)

    out = sebottle2neck_forward(x, params, width=width, scale=SCALE)
    out = jax.block_until_ready(out)
    assert out.shape == (B, PLANES * 2, H, W)
    assert bool(jnp.all(jnp.isfinite(out)))
    print("KERNEL_OK")
</pallas_src>

<mosaic_0001>
module attributes {stable_mosaic.version = 11 : i64} {
  func.func @sebottle2neck_kernel(%arg0: i32, %arg1: memref<32x512xf32, #tpu.memory_space<vmem>>, %arg2: memref<36x512xf32, #tpu.memory_space<vmem>>, %arg3: memref<16x32xbf16, #tpu.memory_space<vmem>>, %arg4: memref<3x4x36xbf16, #tpu.memory_space<vmem>>, %arg5: memref<32x16xbf16, #tpu.memory_space<vmem>>, %arg6: memref<2x5x32x1xf32, #tpu.memory_space<vmem>>, %arg7: memref<2x32xbf16, #tpu.memory_space<vmem>>, %arg8: memref<32x2xbf16, #tpu.memory_space<vmem>>, %arg9: memref<32x512xf32, #tpu.memory_space<vmem>>) attributes {dimension_semantics = [#tpu.dimension_semantics<arbitrary>], iteration_bounds = array<i64: 1>, scalar_prefetch = 0 : i64, scratch_operands = 0 : i64, tpu.core_type = #tpu.core_type<tc>, window_params = [{pipeline_mode = #tpu.pipeline_mode<synchronous>, transform_indices = @transform_0, window_bounds = array<i64: 32, 512>}, {pipeline_mode = #tpu.pipeline_mode<synchronous>, transform_indices = @transform_1, window_bounds = array<i64: 36, 512>}, {pipeline_mode = #tpu.pipeline_mode<synchronous>, transform_indices = @transform_2, window_bounds = array<i64: 16, 32>}, {pipeline_mode = #tpu.pipeline_mode<synchronous>, transform_indices = @transform_3, window_bounds = array<i64: 3, 4, 36>}, {pipeline_mode = #tpu.pipeline_mode<synchronous>, transform_indices = @transform_4, window_bounds = array<i64: 32, 16>}, {pipeline_mode = #tpu.pipeline_mode<synchronous>, transform_indices = @transform_5, window_bounds = array<i64: 2, 5, 32, 1>}, {pipeline_mode = #tpu.pipeline_mode<synchronous>, transform_indices = @transform_6, window_bounds = array<i64: 2, 32>}, {pipeline_mode = #tpu.pipeline_mode<synchronous>, transform_indices = @transform_7, window_bounds = array<i64: 32, 2>}, {pipeline_mode = #tpu.pipeline_mode<synchronous>, transform_indices = @transform_8, window_bounds = array<i64: 32, 512>}]} {
    %c0 = arith.constant 0 : index
    %c0_0 = arith.constant 0 : index
    %0 = vector.load %arg1[%c0, %c0_0] : memref<32x512xf32, #tpu.memory_space<vmem>>, vector<32x512xf32>
    %1 = arith.truncf %0 : vector<32x512xf32> to vector<32x512xbf16>
    %c0_1 = arith.constant 0 : index
    %c0_2 = arith.constant 0 : index
    %2 = vector.load %arg3[%c0_1, %c0_2] : memref<16x32xbf16, #tpu.memory_space<vmem>>, vector<16x32xbf16>
    %cst = arith.constant dense<0.000000e+00> : vector<16x512xf32>
    %3 = tpu.matmul %2, %1, %cst {dimension_numbers = #tpu.dot_dimension_numbers<[1], [0], [0], [1], [0, 0, 1, 1], [], []>} : vector<16x32xbf16>, vector<32x512xbf16>, vector<16x512xf32> -> vector<16x512xf32>
    %c0_3 = arith.constant 0 : index
    %c0_4 = arith.constant 0 : index
    %c0_5 = arith.constant 0 : index
    %c0_6 = arith.constant 0 : index
    %4 = vector.load %arg6[%c0_3, %c0_4, %c0_5, %c0_6] : memref<2x5x32x1xf32, #tpu.memory_space<vmem>>, vector<1x1x32x1xf32>
    %5 = vector.shape_cast %4 : vector<1x1x32x1xf32> to vector<32x1xf32>
    %6 = vector.extract_strided_slice %5 {offsets = [0, 0], sizes = [16, 1], strides = [1, 1]} : vector<32x1xf32> to vector<16x1xf32>
    %c1 = arith.constant 1 : index
    %c0_7 = arith.constant 0 : index
    %c0_8 = arith.constant 0 : index
    %c0_9 = arith.constant 0 : index
    %7 = vector.load %arg6[%c1, %c0_7, %c0_8, %c0_9] : memref<2x5x32x1xf32, #tpu.memory_space<vmem>>, vector<1x1x32x1xf32>
    %8 = vector.shape_cast %7 : vector<1x1x32x1xf32> to vector<32x1xf32>
    %9 = vector.extract_strided_slice %8 {offsets = [0, 0], sizes = [16, 1], strides = [1, 1]} : vector<32x1xf32> to vector<16x1xf32>
    %cst_10 = arith.constant dense<0.000000e+00> : vector<16xf32>
    %10 = vector.multi_reduction <add>, %3, %cst_10 [1] : vector<16x512xf32> to vector<16xf32>
    %11 = vector.shape_cast %10 : vector<16xf32> to vector<16x1xf32>
    %cst_11 = arith.constant 5.120000e+02 : f32
    %12 = vector.broadcast %cst_11 : f32 to vector<16x1xf32>
    %13 = arith.divf %11, %12 : vector<16x1xf32>
    %14 = vector.broadcast %13 : vector<16x1xf32> to vector<16x512xf32>
    %15 = arith.subf %3, %14 : vector<16x512xf32>
    %16 = arith.mulf %15, %15 : vector<16x512xf32>
    %cst_12 = arith.constant dense<0.000000e+00> : vector<16xf32>
    %17 = vector.multi_reduction <add>, %16, %cst_12 [1] : vector<16x512xf32> to vector<16xf32>
    %18 = vector.shape_cast %17 : vector<16xf32> to vector<16x1xf32>
    %cst_13 = arith.constant 5.120000e+02 : f32
    %19 = vector.broadcast %cst_13 : f32 to vector<16x1xf32>
    %20 = arith.divf %18, %19 : vector<16x1xf32>
    %21 = vector.broadcast %13 : vector<16x1xf32> to vector<16x512xf32>
    %22 = arith.subf %3, %21 : vector<16x512xf32>
    %cst_14 = arith.constant 9.99999974E-6 : f32
    %23 = vector.broadcast %cst_14 : f32 to vector<16x1xf32>
    %24 = arith.addf %20, %23 : vector<16x1xf32>
    %25 = math.rsqrt %24 : vector<16x1xf32>
    %26 = vector.broadcast %25 : vector<16x1xf32> to vector<16x512xf32>
    %27 = arith.mulf %22, %26 : vector<16x512xf32>
    %28 = vector.broadcast %6 : vector<16x1xf32> to vector<16x512xf32>
    %29 = arith.mulf %27, %28 : vector<16x512xf32>
    %30 = vector.broadcast %9 : vector<16x1xf32> to vector<16x512xf32>
    %31 = arith.addf %29, %30 : vector<16x512xf32>
    %cst_15 = arith.constant 0.000000e+00 : f32
    %32 = vector.broadcast %cst_15 : f32 to vector<16x512xf32>
    %33 = arith.maximumf %31, %32 : vector<16x512xf32>
    %34 = vector.extract_strided_slice %33 {offsets = [0, 0], sizes = [4, 512], strides = [1, 1]} : vector<16x512xf32> to vector<4x512xf32>
    %c17_i32 = arith.constant 17 : i32
    %35 = tpu.dynamic_rotate %34 by %c17_i32 dim 1 : vector<4x512xf32>, i32 -> vector<4x512xf32>
    %c16_i32 = arith.constant 16 : i32
    %36 = tpu.dynamic_rotate %34 by %c16_i32 dim 1 : vector<4x512xf32>, i32 -> vector<4x512xf32>
    %c15_i32 = arith.constant 15 : i32
    %37 = tpu.dynamic_rotate %34 by %c15_i32 dim 1 : vector<4x512xf32>, i32 -> vector<4x512xf32>
    %c1_i32 = arith.constant 1 : i32
    %38 = tpu.dynamic_rotate %34 by %c1_i32 dim 1 : vector<4x512xf32>, i32 -> vector<4x512xf32>
    %c511_i32 = arith.constant 511 : i32
    %39 = tpu.dynamic_rotate %34 by %c511_i32 dim 1 : vector<4x512xf32>, i32 -> vector<4x512xf32>
    %c497_i32 = arith.constant 497 : i32
    %40 = tpu.dynamic_rotate %34 by %c497_i32 dim 1 : vector<4x512xf32>, i32 -> vector<4x512xf32>
    %c496_i32 = arith.constant 496 : i32
    %41 = tpu.dynamic_rotate %34 by %c496_i32 dim 1 : vector<4x512xf32>, i32 -> vector<4x512xf32>
    %c495_i32 = arith.constant 495 : i32
    %42 = tpu.dynamic_rotate %34 by %c495_i32 dim 1 : vector<4x512xf32>, i32 -> vector<4x512xf32>
    %43 = tpu.concatenate %35, %36, %37, %38, %34, %39, %40, %41, %42 in 0 : vector<4x512xf32>, vector<4x512xf32>, vector<4x512xf32>, vector<4x512xf32>, vector<4x512xf32>, vector<4x512xf32>, vector<4x512xf32>, vector<4x512xf32>, vector<4x512xf32> -> vector<36x512xf32>
    %c0_16 = arith.constant 0 : index
    %c0_17 = arith.constant 0 : index
    %44 = vector.load %arg2[%c0_16, %c0_17] : memref<36x512xf32, #tpu.memory_space<vmem>>, vector<36x512xf32>
    %45 = arith.mulf %43, %44 : vector<36x512xf32>
    %c0_18 = arith.constant 0 : index
    %c0_19 = arith.constant 0 : index
    %c0_20 = arith.constant 0 : index
    %46 = vector.load %arg4[%c0_18, %c0_19, %c0_20] : memref<3x4x36xbf16, #tpu.memory_space<vmem>>, vector<1x4x36xbf16>
    %47 = vector.shape_cast %46 : vector<1x4x36xbf16> to vector<4x36xbf16>
    %48 = arith.truncf %45 : vector<36x512xf32> to vector<36x512xbf16>
    %cst_21 = arith.constant dense<0.000000e+00> : vector<4x512xf32>
    %49 = tpu.matmul %47, %48, %cst_21 {dimension_numbers = #tpu.dot_dimension_numbers<[1], [0], [0], [1], [0, 0, 1, 1], [], []>} : vector<4x36xbf16>, vector<36x512xbf16>, vector<4x512xf32> -> vector<4x512xf32>
    %c0_22 = arith.constant 0 : index
    %c1_23 = arith.constant 1 : index
    %c0_24 = arith.constant 0 : index
    %c0_25 = arith.constant 0 : index
    %50 = vector.load %arg6[%c0_22, %c1_23, %c0_24, %c0_25] : memref<2x5x32x1xf32, #tpu.memory_space<vmem>>, vector<1x1x32x1xf32>
    %51 = vector.shape_cast %50 : vector<1x1x32x1xf32> to vector<32x1xf32>
    %52 = vector.extract_strided_slice %51 {offsets = [0, 0], sizes = [4, 1], strides = [1, 1]} : vector<32x1xf32> to vector<4x1xf32>
    %c1_26 = arith.constant 1 : index
    %c1_27 = arith.constant 1 : index
    %c0_28 = arith.constant 0 : index
    %c0_29 = arith.constant 0 : index
    %53 = vector.load %arg6[%c1_26, %c1_27, %c0_28, %c0_29] : memref<2x5x32x1xf32, #tpu.memory_space<vmem>>, vector<1x1x32x1xf32>
    %54 = vector.shape_cast %53 : vector<1x1x32x1xf32> to vector<32x1xf32>
    %55 = vector.extract_strided_slice %54 {offsets = [0, 0], sizes = [4, 1], strides = [1, 1]} : vector<32x1xf32> to vector<4x1xf32>
    %cst_30 = arith.constant dense<0.000000e+00> : vector<4xf32>
    %56 = vector.multi_reduction <add>, %49, %cst_30 [1] : vector<4x512xf32> to vector<4xf32>
    %57 = vector.shape_cast %56 : vector<4xf32> to vector<4x1xf32>
    %cst_31 = arith.constant 5.120000e+02 : f32
    %58 = vector.broadcast %cst_31 : f32 to vector<4x1xf32>
    %59 = arith.divf %57, %58 : vector<4x1xf32>
    %60 = vector.broadcast %59 : vector<4x1xf32> to vector<4x512xf32>
    %61 = arith.subf %49, %60 : vector<4x512xf32>
    %62 = arith.mulf %61, %61 : vector<4x512xf32>
    %cst_32 = arith.constant dense<0.000000e+00> : vector<4xf32>
    %63 = vector.multi_reduction <add>, %62, %cst_32 [1] : vector<4x512xf32> to vector<4xf32>
    %64 = vector.shape_cast %63 : vector<4xf32> to vector<4x1xf32>
    %cst_33 = arith.constant 5.120000e+02 : f32
    %65 = vector.broadcast %cst_33 : f32 to vector<4x1xf32>
    %66 = arith.divf %64, %65 : vector<4x1xf32>
    %67 = vector.broadcast %59 : vector<4x1xf32> to vector<4x512xf32>
    %68 = arith.subf %49, %67 : vector<4x512xf32>
    %cst_34 = arith.constant 9.99999974E-6 : f32
    %69 = vector.broadcast %cst_34 : f32 to vector<4x1xf32>
    %70 = arith.addf %66, %69 : vector<4x1xf32>
    %71 = math.rsqrt %70 : vector<4x1xf32>
    %72 = vector.broadcast %71 : vector<4x1xf32> to vector<4x512xf32>
    %73 = arith.mulf %68, %72 : vector<4x512xf32>
    %74 = vector.broadcast %52 : vector<4x1xf32> to vector<4x512xf32>
    %75 = arith.mulf %73, %74 : vector<4x512xf32>
    %76 = vector.broadcast %55 : vector<4x1xf32> to vector<4x512xf32>
    %77 = arith.addf %75, %76 : vector<4x512xf32>
    %cst_35 = arith.constant 0.000000e+00 : f32
    %78 = vector.broadcast %cst_35 : f32 to vector<4x512xf32>
    %79 = arith.maximumf %77, %78 : vector<4x512xf32>
    %80 = vector.extract_strided_slice %33 {offsets = [4, 0], sizes = [4, 512], strides = [1, 1]} : vector<16x512xf32> to vector<4x512xf32>
    %81 = arith.addf %79, %80 : vector<4x512xf32>
    %c17_i32_36 = arith.constant 17 : i32
    %82 = tpu.dynamic_rotate %81 by %c17_i32_36 dim 1 : vector<4x512xf32>, i32 -> vector<4x512xf32>
    %c16_i32_37 = arith.constant 16 : i32
    %83 = tpu.dynamic_rotate %81 by %c16_i32_37 dim 1 : vector<4x512xf32>, i32 -> vector<4x512xf32>
    %c15_i32_38 = arith.constant 15 : i32
    %84 = tpu.dynamic_rotate %81 by %c15_i32_38 dim 1 : vector<4x512xf32>, i32 -> vector<4x512xf32>
    %c1_i32_39 = arith.constant 1 : i32
    %85 = tpu.dynamic_rotate %81 by %c1_i32_39 dim 1 : vector<4x512xf32>, i32 -> vector<4x512xf32>
    %c511_i32_40 = arith.constant 511 : i32
    %86 = tpu.dynamic_rotate %81 by %c511_i32_40 dim 1 : vector<4x512xf32>, i32 -> vector<4x512xf32>
    %c497_i32_41 = arith.constant 497 : i32
    %87 = tpu.dynamic_rotate %81 by %c497_i32_41 dim 1 : vector<4x512xf32>, i32 -> vector<4x512xf32>
    %c496_i32_42 = arith.constant 496 : i32
    %88 = tpu.dynamic_rotate %81 by %c496_i32_42 dim 1 : vector<4x512xf32>, i32 -> vector<4x512xf32>
    %c495_i32_43 = arith.constant 495 : i32
    %89 = tpu.dynamic_rotate %81 by %c495_i32_43 dim 1 : vector<4x512xf32>, i32 -> vector<4x512xf32>
    %90 = tpu.concatenate %82, %83, %84, %85, %81, %86, %87, %88, %89 in 0 : vector<4x512xf32>, vector<4x512xf32>, vector<4x512xf32>, vector<4x512xf32>, vector<4x512xf32>, vector<4x512xf32>, vector<4x512xf32>, vector<4x512xf32>, vector<4x512xf32> -> vector<36x512xf32>
    %c0_44 = arith.constant 0 : index
    %c0_45 = arith.constant 0 : index
    %91 = vector.load %arg2[%c0_44, %c0_45] : memref<36x512xf32, #tpu.memory_space<vmem>>, vector<36x512xf32>
    %92 = arith.mulf %90, %91 : vector<36x512xf32>
    %c1_46 = arith.constant 1 : index
    %c0_47 = arith.constant 0 : index
    %c0_48 = arith.constant 0 : index
    %93 = vector.load %arg4[%c1_46, %c0_47, %c0_48] : memref<3x4x36xbf16, #tpu.memory_space<vmem>>, vector<1x4x36xbf16>
    %94 = vector.shape_cast %93 : vector<1x4x36xbf16> to vector<4x36xbf16>
    %95 = arith.truncf %92 : vector<36x512xf32> to vector<36x512xbf16>
    %cst_49 = arith.constant dense<0.000000e+00> : vector<4x512xf32>
    %96 = tpu.matmul %94, %95, %cst_49 {dimension_numbers = #tpu.dot_dimension_numbers<[1], [0], [0], [1], [0, 0, 1, 1], [], []>} : vector<4x36xbf16>, vector<36x512xbf16>, vector<4x512xf32> -> vector<4x512xf32>
    %c0_50 = arith.constant 0 : index
    %c2 = arith.constant 2 : index
    %c0_51 = arith.constant 0 : index
    %c0_52 = arith.constant 0 : index
    %97 = vector.load %arg6[%c0_50, %c2, %c0_51, %c0_52] : memref<2x5x32x1xf32, #tpu.memory_space<vmem>>, vector<1x1x32x1xf32>
    %98 = vector.shape_cast %97 : vector<1x1x32x1xf32> to vector<32x1xf32>
    %99 = vector.extract_strided_slice %98 {offsets = [0, 0], sizes = [4, 1], strides = [1, 1]} : vector<32x1xf32> to vector<4x1xf32>
    %c1_53 = arith.constant 1 : index
    %c2_54 = arith.constant 2 : index
    %c0_55 = arith.constant 0 : index
    %c0_56 = arith.constant 0 : index
    %100 = vector.load %arg6[%c1_53, %c2_54, %c0_55, %c0_56] : memref<2x5x32x1xf32, #tpu.memory_space<vmem>>, vector<1x1x32x1xf32>
    %101 = vector.shape_cast %100 : vector<1x1x32x1xf32> to vector<32x1xf32>
    %102 = vector.extract_strided_slice %101 {offsets = [0, 0], sizes = [4, 1], strides = [1, 1]} : vector<32x1xf32> to vector<4x1xf32>
    %cst_57 = arith.constant dense<0.000000e+00> : vector<4xf32>
    %103 = vector.multi_reduction <add>, %96, %cst_57 [1] : vector<4x512xf32> to vector<4xf32>
    %104 = vector.shape_cast %103 : vector<4xf32> to vector<4x1xf32>
    %cst_58 = arith.constant 5.120000e+02 : f32
    %105 = vector.broadcast %cst_58 : f32 to vector<4x1xf32>
    %106 = arith.divf %104, %105 : vector<4x1xf32>
    %107 = vector.broadcast %106 : vector<4x1xf32> to vector<4x512xf32>
    %108 = arith.subf %96, %107 : vector<4x512xf32>
    %109 = arith.mulf %108, %108 : vector<4x512xf32>
    %cst_59 = arith.constant dense<0.000000e+00> : vector<4xf32>
    %110 = vector.multi_reduction <add>, %109, %cst_59 [1] : vector<4x512xf32> to vector<4xf32>
    %111 = vector.shape_cast %110 : vector<4xf32> to vector<4x1xf32>
    %cst_60 = arith.constant 5.120000e+02 : f32
    %112 = vector.broadcast %cst_60 : f32 to vector<4x1xf32>
    %113 = arith.divf %111, %112 : vector<4x1xf32>
    %114 = vector.broadcast %106 : vector<4x1xf32> to vector<4x512xf32>
    %115 = arith.subf %96, %114 : vector<4x512xf32>
    %cst_61 = arith.constant 9.99999974E-6 : f32
    %116 = vector.broadcast %cst_61 : f32 to vector<4x1xf32>
    %117 = arith.addf %113, %116 : vector<4x1xf32>
    %118 = math.rsqrt %117 : vector<4x1xf32>
    %119 = vector.broadcast %118 : vector<4x1xf32> to vector<4x512xf32>
    %120 = arith.mulf %115, %119 : vector<4x512xf32>
    %121 = vector.broadcast %99 : vector<4x1xf32> to vector<4x512xf32>
    %122 = arith.mulf %120, %121 : vector<4x512xf32>
    %123 = vector.broadcast %102 : vector<4x1xf32> to vector<4x512xf32>
    %124 = arith.addf %122, %123 : vector<4x512xf32>
    %cst_62 = arith.constant 0.000000e+00 : f32
    %125 = vector.broadcast %cst_62 : f32 to vector<4x512xf32>
    %126 = arith.maximumf %124, %125 : vector<4x512xf32>
    %127 = vector.extract_strided_slice %33 {offsets = [8, 0], sizes = [4, 512], strides = [1, 1]} : vector<16x512xf32> to vector<4x512xf32>
    %128 = arith.addf %126, %127 : vector<4x512xf32>
    %c17_i32_63 = arith.constant 17 : i32
    %129 = tpu.dynamic_rotate %128 by %c17_i32_63 dim 1 : vector<4x512xf32>, i32 -> vector<4x512xf32>
    %c16_i32_64 = arith.constant 16 : i32
    %130 = tpu.dynamic_rotate %128 by %c16_i32_64 dim 1 : vector<4x512xf32>, i32 -> vector<4x512xf32>
    %c15_i32_65 = arith.constant 15 : i32
    %131 = tpu.dynamic_rotate %128 by %c15_i32_65 dim 1 : vector<4x512xf32>, i32 -> vector<4x512xf32>
    %c1_i32_66 = arith.constant 1 : i32
    %132 = tpu.dynamic_rotate %128 by %c1_i32_66 dim 1 : vector<4x512xf32>, i32 -> vector<4x512xf32>
    %c511_i32_67 = arith.constant 511 : i32
    %133 = tpu.dynamic_rotate %128 by %c511_i32_67 dim 1 : vector<4x512xf32>, i32 -> vector<4x512xf32>
    %c497_i32_68 = arith.constant 497 : i32
    %134 = tpu.dynamic_rotate %128 by %c497_i32_68 dim 1 : vector<4x512xf32>, i32 -> vector<4x512xf32>
    %c496_i32_69 = arith.constant 496 : i32
    %135 = tpu.dynamic_rotate %128 by %c496_i32_69 dim 1 : vector<4x512xf32>, i32 -> vector<4x512xf32>
    %c495_i32_70 = arith.constant 495 : i32
    %136 = tpu.dynamic_rotate %128 by %c495_i32_70 dim 1 : vector<4x512xf32>, i32 -> vector<4x512xf32>
    %137 = tpu.concatenate %129, %130, %131, %132, %128, %133, %134, %135, %136 in 0 : vector<4x512xf32>, vector<4x512xf32>, vector<4x512xf32>, vector<4x512xf32>, vector<4x512xf32>, vector<4x512xf32>, vector<4x512xf32>, vector<4x512xf32>, vector<4x512xf32> -> vector<36x512xf32>
    %c0_71 = arith.constant 0 : index
    %c0_72 = arith.constant 0 : index
    %138 = vector.load %arg2[%c0_71, %c0_72] : memref<36x512xf32, #tpu.memory_space<vmem>>, vector<36x512xf32>
    %139 = arith.mulf %137, %138 : vector<36x512xf32>
    %c2_73 = arith.constant 2 : index
    %c0_74 = arith.constant 0 : index
    %c0_75 = arith.constant 0 : index
    %140 = vector.load %arg4[%c2_73, %c0_74, %c0_75] : memref<3x4x36xbf16, #tpu.memory_space<vmem>>, vector<1x4x36xbf16>
    %141 = vector.shape_cast %140 : vector<1x4x36xbf16> to vector<4x36xbf16>
    %142 = arith.truncf %139 : vector<36x512xf32> to vector<36x512xbf16>
    %cst_76 = arith.constant dense<0.000000e+00> : vector<4x512xf32>
    %143 = tpu.matmul %141, %142, %cst_76 {dimension_numbers = #tpu.dot_dimension_numbers<[1], [0], [0], [1], [0, 0, 1, 1], [], []>} : vector<4x36xbf16>, vector<36x512xbf16>, vector<4x512xf32> -> vector<4x512xf32>
    %c0_77 = arith.constant 0 : index
    %c3 = arith.constant 3 : index
    %c0_78 = arith.constant 0 : index
    %c0_79 = arith.constant 0 : index
    %144 = vector.load %arg6[%c0_77, %c3, %c0_78, %c0_79] : memref<2x5x32x1xf32, #tpu.memory_space<vmem>>, vector<1x1x32x1xf32>
    %145 = vector.shape_cast %144 : vector<1x1x32x1xf32> to vector<32x1xf32>
    %146 = vector.extract_strided_slice %145 {offsets = [0, 0], sizes = [4, 1], strides = [1, 1]} : vector<32x1xf32> to vector<4x1xf32>
    %c1_80 = arith.constant 1 : index
    %c3_81 = arith.constant 3 : index
    %c0_82 = arith.constant 0 : index
    %c0_83 = arith.constant 0 : index
    %147 = vector.load %arg6[%c1_80, %c3_81, %c0_82, %c0_83] : memref<2x5x32x1xf32, #tpu.memory_space<vmem>>, vector<1x1x32x1xf32>
    %148 = vector.shape_cast %147 : vector<1x1x32x1xf32> to vector<32x1xf32>
    %149 = vector.extract_strided_slice %148 {offsets = [0, 0], sizes = [4, 1], strides = [1, 1]} : vector<32x1xf32> to vector<4x1xf32>
    %cst_84 = arith.constant dense<0.000000e+00> : vector<4xf32>
    %150 = vector.multi_reduction <add>, %143, %cst_84 [1] : vector<4x512xf32> to vector<4xf32>
    %151 = vector.shape_cast %150 : vector<4xf32> to vector<4x1xf32>
    %cst_85 = arith.constant 5.120000e+02 : f32
    %152 = vector.broadcast %cst_85 : f32 to vector<4x1xf32>
    %153 = arith.divf %151, %152 : vector<4x1xf32>
    %154 = vector.broadcast %153 : vector<4x1xf32> to vector<4x512xf32>
    %155 = arith.subf %143, %154 : vector<4x512xf32>
    %156 = arith.mulf %155, %155 : vector<4x512xf32>
    %cst_86 = arith.constant dense<0.000000e+00> : vector<4xf32>
    %157 = vector.multi_reduction <add>, %156, %cst_86 [1] : vector<4x512xf32> to vector<4xf32>
    %158 = vector.shape_cast %157 : vector<4xf32> to vector<4x1xf32>
    %cst_87 = arith.constant 5.120000e+02 : f32
    %159 = vector.broadcast %cst_87 : f32 to vector<4x1xf32>
    %160 = arith.divf %158, %159 : vector<4x1xf32>
    %161 = vector.broadcast %153 : vector<4x1xf32> to vector<4x512xf32>
    %162 = arith.subf %143, %161 : vector<4x512xf32>
    %cst_88 = arith.constant 9.99999974E-6 : f32
    %163 = vector.broadcast %cst_88 : f32 to vector<4x1xf32>
    %164 = arith.addf %160, %163 : vector<4x1xf32>
    %165 = math.rsqrt %164 : vector<4x1xf32>
    %166 = vector.broadcast %165 : vector<4x1xf32> to vector<4x512xf32>
    %167 = arith.mulf %162, %166 : vector<4x512xf32>
    %168 = vector.broadcast %146 : vector<4x1xf32> to vector<4x512xf32>
    %169 = arith.mulf %167, %168 : vector<4x512xf32>
    %170 = vector.broadcast %149 : vector<4x1xf32> to vector<4x512xf32>
    %171 = arith.addf %169, %170 : vector<4x512xf32>
    %cst_89 = arith.constant 0.000000e+00 : f32
    %172 = vector.broadcast %cst_89 : f32 to vector<4x512xf32>
    %173 = arith.maximumf %171, %172 : vector<4x512xf32>
    %174 = vector.extract_strided_slice %33 {offsets = [12, 0], sizes = [4, 512], strides = [1, 1]} : vector<16x512xf32> to vector<4x512xf32>
    %175 = tpu.concatenate %79, %126, %173, %174 in 0 : vector<4x512xf32>, vector<4x512xf32>, vector<4x512xf32>, vector<4x512xf32> -> vector<16x512xf32>
    %176 = arith.truncf %175 : vector<16x512xf32> to vector<16x512xbf16>
    %c0_90 = arith.constant 0 : index
    %c0_91 = arith.constant 0 : index
    %177 = vector.load %arg5[%c0_90, %c0_91] : memref<32x16xbf16, #tpu.memory_space<vmem>>, vector<32x16xbf16>
    %cst_92 = arith.constant dense<0.000000e+00> : vector<32x512xf32>
    %178 = tpu.matmul %177, %176, %cst_92 {dimension_numbers = #tpu.dot_dimension_numbers<[1], [0], [0], [1], [0, 0, 1, 1], [], []>} : vector<32x16xbf16>, vector<16x512xbf16>, vector<32x512xf32> -> vector<32x512xf32>
    %c0_93 = arith.constant 0 : index
    %c4 = arith.constant 4 : index
    %c0_94 = arith.constant 0 : index
    %c0_95 = arith.constant 0 : index
    %179 = vector.load %arg6[%c0_93, %c4, %c0_94, %c0_95] : memref<2x5x32x1xf32, #tpu.memory_space<vmem>>, vector<1x1x32x1xf32>
    %180 = vector.shape_cast %179 : vector<1x1x32x1xf32> to vector<32x1xf32>
    %c1_96 = arith.constant 1 : index
    %c4_97 = arith.constant 4 : index
    %c0_98 = arith.constant 0 : index
    %c0_99 = arith.constant 0 : index
    %181 = vector.load %arg6[%c1_96, %c4_97, %c0_98, %c0_99] : memref<2x5x32x1xf32, #tpu.memory_space<vmem>>, vector<1x1x32x1xf32>
    %182 = vector.shape_cast %181 : vector<1x1x32x1xf32> to vector<32x1xf32>
    %cst_100 = arith.constant dense<0.000000e+00> : vector<32xf32>
    %183 = vector.multi_reduction <add>, %178, %cst_100 [1] : vector<32x512xf32> to vector<32xf32>
    %184 = vector.shape_cast %183 : vector<32xf32> to vector<32x1xf32>
    %cst_101 = arith.constant 5.120000e+02 : f32
    %185 = vector.broadcast %cst_101 : f32 to vector<32x1xf32>
    %186 = arith.divf %184, %185 : vector<32x1xf32>
    %187 = vector.broadcast %186 : vector<32x1xf32> to vector<32x512xf32>
    %188 = arith.subf %178, %187 : vector<32x512xf32>
    %189 = arith.mulf %188, %188 : vector<32x512xf32>
    %cst_102 = arith.constant dense<0.000000e+00> : vector<32xf32>
    %190 = vector.multi_reduction <add>, %189, %cst_102 [1] : vector<32x512xf32> to vector<32xf32>
    %191 = vector.shape_cast %190 : vector<32xf32> to vector<32x1xf32>
    %cst_103 = arith.constant 5.120000e+02 : f32
    %192 = vector.broadcast %cst_103 : f32 to vector<32x1xf32>
    %193 = arith.divf %191, %192 : vector<32x1xf32>
    %194 = vector.broadcast %186 : vector<32x1xf32> to vector<32x512xf32>
    %195 = arith.subf %178, %194 : vector<32x512xf32>
    %cst_104 = arith.constant 9.99999974E-6 : f32
    %196 = vector.broadcast %cst_104 : f32 to vector<32x1xf32>
    %197 = arith.addf %193, %196 : vector<32x1xf32>
    %198 = math.rsqrt %197 : vector<32x1xf32>
    %199 = vector.broadcast %198 : vector<32x1xf32> to vector<32x512xf32>
    %200 = arith.mulf %195, %199 : vector<32x512xf32>
    %201 = vector.broadcast %180 : vector<32x1xf32> to vector<32x512xf32>
    %202 = arith.mulf %200, %201 : vector<32x512xf32>
    %203 = vector.broadcast %182 : vector<32x1xf32> to vector<32x512xf32>
    %204 = arith.addf %202, %203 : vector<32x512xf32>
    %205 = vector.extract_strided_slice %204 {offsets = [0, 0], sizes = [32, 256], strides = [1, 1]} : vector<32x512xf32> to vector<32x256xf32>
    %cst_105 = arith.constant dense<0.000000e+00> : vector<32xf32>
    %206 = vector.multi_reduction <add>, %205, %cst_105 [1] : vector<32x256xf32> to vector<32xf32>
    %207 = vector.shape_cast %206 : vector<32xf32> to vector<32x1xf32>
    %cst_106 = arith.constant 2.560000e+02 : f32
    %208 = vector.broadcast %cst_106 : f32 to vector<32x1xf32>
    %209 = arith.divf %207, %208 : vector<32x1xf32>
    %210 = vector.extract_strided_slice %204 {offsets = [0, 256], sizes = [32, 256], strides = [1, 1]} : vector<32x512xf32> to vector<32x256xf32>
    %cst_107 = arith.constant dense<0.000000e+00> : vector<32xf32>
    %211 = vector.multi_reduction <add>, %210, %cst_107 [1] : vector<32x256xf32> to vector<32xf32>
    %212 = vector.shape_cast %211 : vector<32xf32> to vector<32x1xf32>
    %cst_108 = arith.constant 2.560000e+02 : f32
    %213 = vector.broadcast %cst_108 : f32 to vector<32x1xf32>
    %214 = arith.divf %212, %213 : vector<32x1xf32>
    %215 = tpu.concatenate %209, %214 in 1 : vector<32x1xf32>, vector<32x1xf32> -> vector<32x2xf32>
    %c0_109 = arith.constant 0 : index
    %c0_110 = arith.constant 0 : index
    %216 = vector.load %arg7[%c0_109, %c0_110] : memref<2x32xbf16, #tpu.memory_space<vmem>>, vector<2x32xbf16>
    %217 = arith.truncf %215 : vector<32x2xf32> to vector<32x2xbf16>
    %cst_111 = arith.constant dense<0.000000e+00> : vector<2x2xf32>
    %218 = tpu.matmul %216, %217, %cst_111 {dimension_numbers = #tpu.dot_dimension_numbers<[1], [0], [0], [1], [0, 0, 1, 1], [], []>} : vector<2x32xbf16>, vector<32x2xbf16>, vector<2x2xf32> -> vector<2x2xf32>
    %cst_112 = arith.constant 0.000000e+00 : f32
    %219 = vector.broadcast %cst_112 : f32 to vector<2x2xf32>
    %220 = arith.maximumf %218, %219 : vector<2x2xf32>
    %c0_113 = arith.constant 0 : index
    %c0_114 = arith.constant 0 : index
    %221 = vector.load %arg8[%c0_113, %c0_114] : memref<32x2xbf16, #tpu.memory_space<vmem>>, vector<32x2xbf16>
    %222 = arith.truncf %220 : vector<2x2xf32> to vector<2x2xbf16>
    %cst_115 = arith.constant dense<0.000000e+00> : vector<32x2xf32>
    %223 = tpu.matmul %221, %222, %cst_115 {dimension_numbers = #tpu.dot_dimension_numbers<[1], [0], [0], [1], [0, 0, 1, 1], [], []>} : vector<32x2xbf16>, vector<2x2xbf16>, vector<32x2xf32> -> vector<32x2xf32>
    %224 = arith.negf %223 : vector<32x2xf32>
    %225 = math.exp %224 : vector<32x2xf32>
    %cst_116 = arith.constant 1.000000e+00 : f32
    %226 = vector.broadcast %cst_116 : f32 to vector<32x2xf32>
    %227 = arith.addf %226, %225 : vector<32x2xf32>
    %228 = arith.divf %226, %227 : vector<32x2xf32>
    %229 = vector.extract_strided_slice %204 {offsets = [0, 0], sizes = [32, 256], strides = [1, 1]} : vector<32x512xf32> to vector<32x256xf32>
    %230 = vector.extract_strided_slice %228 {offsets = [0, 0], sizes = [32, 1], strides = [1, 1]} : vector<32x2xf32> to vector<32x1xf32>
    %231 = vector.broadcast %230 : vector<32x1xf32> to vector<32x256xf32>
    %232 = arith.mulf %229, %231 : vector<32x256xf32>
    %c0_117 = arith.constant 0 : index
    %c0_118 = arith.constant 0 : index
    %233 = vector.load %arg1[%c0_117, %c0_118] : memref<32x512xf32, #tpu.memory_space<vmem>>, vector<32x256xf32>
    %234 = arith.addf %232, %233 : vector<32x256xf32>
    %cst_119 = arith.constant 0.000000e+00 : f32
    %235 = vector.broadcast %cst_119 : f32 to vector<32x256xf32>
    %236 = arith.maximumf %234, %235 : vector<32x256xf32>
    %c0_120 = arith.constant 0 : index
    %c0_121 = arith.constant 0 : index
    %237 = vector.load %arg9[%c0_120, %c0_121] : memref<32x512xf32, #tpu.memory_space<vmem>>, vector<32x256xf32>
    tpu.vector_store %arg9[%c0_120, %c0_121], %236 {strides = array<i32>} : memref<32x512xf32, #tpu.memory_space<vmem>>, vector<32x256xf32>,
    %238 = vector.extract_strided_slice %204 {offsets = [0, 256], sizes = [32, 256], strides = [1, 1]} : vector<32x512xf32> to vector<32x256xf32>
    %239 = vector.extract_strided_slice %228 {offsets = [0, 1], sizes = [32, 1], strides = [1, 1]} : vector<32x2xf32> to vector<32x1xf32>
    %240 = vector.broadcast %239 : vector<32x1xf32> to vector<32x256xf32>
    %241 = arith.mulf %238, %240 : vector<32x256xf32>
    %c0_122 = arith.constant 0 : index
    %c256 = arith.constant 256 : index
    %242 = vector.load %arg1[%c0_122, %c256] : memref<32x512xf32, #tpu.memory_space<vmem>>, vector<32x256xf32>
    %243 = arith.addf %241, %242 : vector<32x256xf32>
    %cst_123 = arith.constant 0.000000e+00 : f32
    %244 = vector.broadcast %cst_123 : f32 to vector<32x256xf32>
    %245 = arith.maximumf %243, %244 : vector<32x256xf32>
    %c0_124 = arith.constant 0 : index
    %c256_125 = arith.constant 256 : index
    %246 = vector.load %arg9[%c0_124, %c256_125] : memref<32x512xf32, #tpu.memory_space<vmem>>, vector<32x256xf32>
    tpu.vector_store %arg9[%c0_124, %c256_125], %245 {strides = array<i32>} : memref<32x512xf32, #tpu.memory_space<vmem>>, vector<32x256xf32>,
    return
  }
  func.func @transform_0(%arg0: i32) -> (i32, i32) {
    %c0_i32 = arith.constant 0 : i32
    %c0_i32_0 = arith.constant 0 : i32
    %c0_i32_1 = arith.constant 0 : i32
    return %c0_i32, %c0_i32_0 : i32, i32
  }
  func.func @transform_1(%arg0: i32) -> (i32, i32) {
    %c0_i32 = arith.constant 0 : i32
    %c0_i32_0 = arith.constant 0 : i32
    %c0_i32_1 = arith.constant 0 : i32
    return %c0_i32, %c0_i32_0 : i32, i32
  }
  func.func @transform_2(%arg0: i32) -> (i32, i32) {
    %c0_i32 = arith.constant 0 : i32
    %c0_i32_0 = arith.constant 0 : i32
    %c0_i32_1 = arith.constant 0 : i32
    return %c0_i32, %c0_i32_0 : i32, i32
  }
  func.func @transform_3(%arg0: i32) -> (i32, i32, i32) {
    %c0_i32 = arith.constant 0 : i32
    %c0_i32_0 = arith.constant 0 : i32
    %c0_i32_1 = arith.constant 0 : i32
    %c0_i32_2 = arith.constant 0 : i32
    return %c0_i32, %c0_i32_0, %c0_i32_1 : i32, i32, i32
  }
  func.func @transform_4(%arg0: i32) -> (i32, i32) {
    %c0_i32 = arith.constant 0 : i32
    %c0_i32_0 = arith.constant 0 : i32
    %c0_i32_1 = arith.constant 0 : i32
    return %c0_i32, %c0_i32_0 : i32, i32
  }
  func.func @transform_5(%arg0: i32) -> (i32, i32, i32, i32) {
    %c0_i32 = arith.constant 0 : i32
    %c0_i32_0 = arith.constant 0 : i32
    %c0_i32_1 = arith.constant 0 : i32
    %c0_i32_2 = arith.constant 0 : i32
    %c0_i32_3 = arith.constant 0 : i32
    return %c0_i32, %c0_i32_0, %c0_i32_1, %c0_i32_2 : i32, i32, i32, i32
  }
  func.func @transform_6(%arg0: i32) -> (i32, i32) {
    %c0_i32 = arith.constant 0 : i32
    %c0_i32_0 = arith.constant 0 : i32
    %c0_i32_1 = arith.constant 0 : i32
    return %c0_i32, %c0_i32_0 : i32, i32
  }
  func.func @transform_7(%arg0: i32) -> (i32, i32) {
    %c0_i32 = arith.constant 0 : i32
    %c0_i32_0 = arith.constant 0 : i32
    %c0_i32_1 = arith.constant 0 : i32
    return %c0_i32, %c0_i32_0 : i32, i32
  }
  func.func @transform_8(%arg0: i32) -> (i32, i32) {
    %c0_i32 = arith.constant 0 : i32
    %c0_i32_0 = arith.constant 0 : i32
    %c0_i32_1 = arith.constant 0 : i32
    return %c0_i32, %c0_i32_0 : i32, i32
  }
}

</mosaic_0001>

<bundles_post_ra>
// kernel: tpu_custom_call.1
= control target key start
LH: loop header
LB: loop body
LE: loop exit
PB: predicated region body
PF: predicated region fallthrough
CT: control target
= control target key end

     0   :  { %s3581_s0 = inlined_call_operand.vmem [shape: f32[32,512], index: 0, kind: input, shape index: {}]   ;;  %s3582_s1 = inlined_call_operand.vmem [shape: f32[36,512], index: 1, kind: input, shape index: {}]   ;;  %s3583_s2 = inlined_call_operand.vmem [shape: bf16[16,32], index: 2, kind: input, shape index: {}]   ;;  %s3584_s3 = inlined_call_operand.vmem [shape: bf16[3,4,36], index: 3, kind: input, shape index: {}]   ;;  %s3585_s4 = inlined_call_operand.vmem [shape: bf16[32,16], index: 4, kind: input, shape index: {}]   ;;  %s3586_s5 = inlined_call_operand.vmem [shape: f32[2,5,32,1], index: 5, kind: input, shape index: {}]   ;;  %s3587_s6 = inlined_call_operand.vmem [shape: bf16[2,32], index: 6, kind: input, shape index: {}]   ;;  %s3588_s7 = inlined_call_operand.vmem [shape: bf16[32,2], index: 7, kind: input, shape index: {}]   ;;  %s3589_s8 = inlined_call_operand.hbm [shape: f32[32,512], index: 8, kind: output, shape index: {}]  }
   0x1   :  { %v39_v0 = vld [vmem:[%s3581_s0 + $0x40] sm:$0xff]  ;;  %v40_v2 = vld [vmem:[%s3581_s0 + $0x48] sm:$0xff]  ;;  %v41_v5 = vld [vmem:[%s3581_s0 + $0x50] sm:$0xff] }
   0x2   :  { %v43_v1 = vld [vmem:[%s3581_s0 + $0x60] sm:$0xff]  ;;  %v44_v4 = vld [vmem:[%s3581_s0 + $0x68] sm:$0xff]  ;;  %v45_v6 = vld [vmem:[%s3581_s0 + $0x70] sm:$0xff] }
   0x3   :  { %v51_v3 = vpack.c.bf16 %v43_v1, %v39_v0  ;;  %v52_v7 = vpack.c.bf16 %v44_v4, %v40_v2  ;;  %v53_v8 = vpack.c.bf16 %v45_v6, %v41_v5  ;;  %v42_v9 = vld [vmem:[%s3581_s0 + $0x58] sm:$0xff]  ;;  %v31_v11 = vld [vmem:[%s3581_s0] sm:$0xff]  ;;  %v32_v14 = vld [vmem:[%s3581_s0 + $0x8] sm:$0xff] }
   0x4   :  { %v46_v10 = vld [vmem:[%s3581_s0 + $0x78] sm:$0xff]  ;;  %v35_v13 = vld [vmem:[%s3581_s0 + $0x20] sm:$0xff]  ;;  %v36_v15 = vld [vmem:[%s3581_s0 + $0x28] sm:$0xff] }
   0x5   :  { %72 = vmatpush.bf16.msra.mxu0 %v51_v3  ;;  %v54_v12 = vpack.c.bf16 %v46_v10, %v42_v9  ;;  %86 = vmatpush.bf16.msra.mxu1 %v52_v7  ;;  %v47_v16 = vpack.c.bf16 %v35_v13, %v31_v11  ;;  %v48_v17 = vpack.c.bf16 %v36_v15, %v32_v14  ;;  %v33_v18 = vld [vmem:[%s3581_s0 + $0x10] sm:$0xff]  ;;  %v34_v20 = vld [vmem:[%s3581_s0 + $0x18] sm:$0xff] }
   0x6   :  { %100 = vmatpush.bf16.msra.mxu2 %v53_v8  ;;  %v37_v19 = vld [vmem:[%s3581_s0 + $0x30] sm:$0xff]  ;;  %v38_v22 = vld [vmem:[%s3581_s0 + $0x38] sm:$0xff] }
   0x7   :  { %114 = vmatpush.bf16.msra.mxu3 %v54_v12  ;;  %v49_v21 = vpack.c.bf16 %v37_v19, %v33_v18 }
   0x8   :  { %13 = vsyncpa [#allocation3], 0  ;;  %v50_v23 = vpack.c.bf16 %v38_v22, %v34_v20  ;;  %v2021_v24 = vld [vmem:[%s3583_s2] sm:$0xff]  ;;  %vm3590_vm0 = vcmask 261120   ;;  %v2131_v32 = vmov 512.0   ;;  %v2132_v36 = vmov 0  }
   0x9   :  { %73 = vmatpush.bf16.msra.mxu0 %v47_v16  ;;  %87 = vmatpush.bf16.msra.mxu1 %v48_v17  ;;  %2047 = vrcp.f32 %v2131_v32  ;;  %v122_v34 = vld [vmem:[%s3586_s5] sm:$0xff]  ;;  %s2133_s20 = smov 127   ;;  %s2134_s21 = smov 111   ;;  %v256_v20 = vlaneseq  ;;  %vm476_vm6 = vcmask 1041408   ;;  %vm402_vm9 = vcmask 1043456  }
   0xa   :  { %101 = vmatpush.bf16.msra.mxu2 %v49_v21  ;;  %2041 = vset.pattern.permute.xlu1 %v2132_v36  ;;  %v1960_v38 = vld [vmem:[%s3586_s5 + $0xa0] sm:$0xff]  ;;  %s2135_s22 = smov 112   ;;  %s2136_s23 = smov 16   ;;  %vm3591_vm15 = vcmask 293888  }
   0xb   :  { %115 = vmatpush.bf16.msra.mxu3 %v50_v23  ;;  %2042 = vset.pattern.permute.xlu0 %v2132_v36  ;;  %s2137_s24 = smov 113   ;;  %s2138_s25 = smov 17   ;;  %v1966_v19 = vld [vmem:[%s3586_s5 + $0x20] sm:$0xff]  ;;  %v2336_v23 = vand.u32 127, %v256_v20 }
   0xc   :  { %1956 = vmatmul.msk.bf16.vlgmr.msra.gmra.mxu0 %vm3590_vm0, %v2021_v24  ;;  %1957 = vmatmul.msk.bf16.vlgmr.msra.gmra.mxu1 %vm3590_vm0, %v2021_v24  ;;  %s2139_s26 = smov 15   ;;  %s2140_s27 = smov 1   ;;  %v1967_v22 = vld [vmem:[%s3586_s5 + $0xc0] sm:$0xff] }
   0xd   :  { %1958 = vmatmul.msk.bf16.vlgmr.msra.gmra.mxu2 %vm3590_vm0, %v2021_v24  ;;  %206 = vperm.xlu1 %2041, %v122_v34   ;;  %vm349_vm5 = vcmp.lt.s32.totalorder %v2336_v23, 111  ;;  %vm310_vm7 = vcmp.lt.s32.totalorder %v2336_v23, 127  ;;  %vm336_vm8 = vcmp.lt.s32.totalorder %v2336_v23, 112  ;;  %vm323_vm10 = vcmp.lt.s32.totalorder %v2336_v23, 113 }
   0xe   :  { %1959 = vmatmul.msk.bf16.vlgmr.msra.gmra.mxu3 %vm3590_vm0, %v2021_v24  ;;  %2043 = vset.pattern.permute.xlu2 %v2132_v36  ;;  %v2342_v24 = vld [vmem:[%s3582_s1 + $0x88] sm:$0xf]  ;;  %vm297_vm11 = vcmp.lt.s32.totalorder %v2336_v23, 1  ;;  %vm271_vm12 = vcmp.lt.s32.totalorder %v2336_v23, 16  ;;  %vm284_vm13 = vcmp.lt.s32.totalorder %v2336_v23, 15  ;;  %vm258_vm14 = vcmp.lt.s32.totalorder %v2336_v23, 17 }
   0xf   :  { %v2048_v33 = vpop.eup %2047 }
  0x10   :  { %v138_v35 = vmul.f32 512.0, %v2048_v33  ;;  %vm142_vm1 = vweird.f32 %v2048_v33 }
  0x12   :  { %v139_v37 = vsub.f32 1.0, %v138_v35 }
  0x14   :  { %v140_v39 = vmul.f32 %v2048_v33, %v139_v37 }
  0x15   :  { %224 = vperm.xlu1 %2041, %v1960_v38  }
  0x16   :  { %v141_v40 = vadd.f32 %v2048_v33, %v140_v39 }
  0x18   :  { %v2252_v41 = vsel %vm142_vm1, %v2048_v33, %v141_v40 }
  0x7f   :  { %v207_v62 = vpop.permute.xlu1 %206 }
  0x87   :  { %v225_v6 = vpop.permute.xlu1 %224 }
  0x89   :  { %v75_v25 = vpop.f32.mrf.mxu0  ;;  %v89_v26 = vpop.f32.mrf.mxu1 }
  0x8a   :  { %v127_v27 = vadd.f32 %v89_v26, %v75_v25 }
  0x90   :  { %v103_v28 = vpop.f32.mrf.mxu2 }
  0x91   :  { %v128_v29 = vadd.f32 %v127_v27, %v103_v28  ;;  %v117_v30 = vpop.f32.mrf.mxu3 }
  0x93   :  { %v129_v31 = vadd.f32 %v128_v29, %v117_v30 }
  0x95   :  { %130 = vadd.xlane.f32.xlu0 %v129_v31 }
 0x108   :  { %v131_v42 = vpop.xlane.xlu0 %130 }
 0x109   :  { %v144_v43 = vmul.f32 %v2252_v41, %v131_v42 }
 0x10b   :  { %v146_v44 = vsub.f32 %v75_v25, %v144_v43  ;;  %v147_v45 = vsub.f32 %v89_v26, %v144_v43  ;;  %v148_v46 = vsub.f32 %v103_v28, %v144_v43  ;;  %v149_v47 = vsub.f32 %v117_v30, %v144_v43 }
 0x10d   :  { %v154_v48 = vmul.f32 %v146_v44, %v146_v44  ;;  %v155_v49 = vmul.f32 %v147_v45, %v147_v45  ;;  %v156_v50 = vmul.f32 %v148_v46, %v148_v46  ;;  %v157_v52 = vmul.f32 %v149_v47, %v149_v47 }
 0x10f   :  { %v162_v51 = vadd.f32 %v155_v49, %v154_v48 }
 0x111   :  { %v163_v53 = vadd.f32 %v162_v51, %v156_v50 }
 0x113   :  { %v164_v54 = vadd.f32 %v163_v53, %v157_v52 }
 0x115   :  { %165 = vadd.xlane.f32.xlu0 %v164_v54 }
 0x188   :  { %v166_v55 = vpop.xlane.xlu0 %165 }
 0x189   :  { %v172_v56 = vmul.f32 %v166_v55, %v2252_v41 }
 0x18b   :  { %v174_v57 = vadd.f32 1e-05, %v172_v56 }
 0x18d   :  { %2049 = vrsqrt.f32 %v174_v57  ;;  %vm182_vm3 = vweird.f32 %v174_v57 }
 0x193   :  { %v2050_v58 = vpop.eup %2049 }
 0x194   :  { %v177_v59 = vmul.f32 %v2050_v58, %v174_v57  ;;  %vm183_vm2 = vweird.f32 %v2050_v58 }
 0x195   :  { %vm184_vm4 = vmor %vm182_vm3, %vm183_vm2 }
 0x196   :  { %v178_v60 = vmul.f32 %v2050_v58, %v177_v59 }
 0x198   :  { %v179_v61 = vmul.f32 0.5, %v178_v60 }
 0x19a   :  { %v180_v63 = vsub.f32 1.5, %v179_v61 }
 0x19c   :  { %v181_v0 = vmul.f32 %v2050_v58, %v180_v63 }
 0x19e   :  { %v185_v1 = vsel %vm184_vm4, %v2050_v58, %v181_v0  ;;  %v2421_v0 = vld [vmem:[%s3582_s1 + $0x8] sm:$0xff] }
 0x19f   :  { %v197_v2 = vmul.f32 %v185_v1, %v147_v45  ;;  %v198_v3 = vmul.f32 %v185_v1, %v148_v46  ;;  %v196_v11 = vmul.f32 %v185_v1, %v146_v44  ;;  %v199_v15 = vmul.f32 %v185_v1, %v149_v47  ;;  %v2378_v45 = vld [vmem:[%s3582_s1 + $0x48] sm:$0xff] }
 0x1a0   :  { %v2383_v46 = vld [vmem:[%s3582_s1 + $0x68] sm:$0xff] }
 0x1a1   :  { %v215_v4 = vmul.f32 %v207_v62, %v197_v2  ;;  %v216_v5 = vmul.f32 %v207_v62, %v198_v3  ;;  %v214_v12 = vmul.f32 %v207_v62, %v196_v11  ;;  %v217_v16 = vmul.f32 %v207_v62, %v199_v15  ;;  %v2426_v1 = vld [vmem:[%s3582_s1 + $0x28] sm:$0xff] }
 0x1a3   :  { %v233_v7 = vadd.f32 %v225_v6, %v215_v4  ;;  %v234_v8 = vadd.f32 %v225_v6, %v216_v5  ;;  %v232_v13 = vadd.f32 %v225_v6, %v214_v12  ;;  %v235_v17 = vadd.f32 %v225_v6, %v217_v16  ;;  %v2442_v12 = vld [vmem:[%s3582_s1 + $0x90] sm:$0xf] }
 0x1a5   :  { %v2256_v9 = vmax.f32 %v233_v7, 0.0  ;;  %v2258_v10 = vmax.f32 %v234_v8, 0.0  ;;  %v2272_v14 = vmax.f32 %v232_v13, 0.0  ;;  %v2286_v18 = vmax.f32 %v235_v17, 0.0  ;;  %v2447_v13 = vld [vmem:[%s3584_s3] sm:$0x3] }
 0x1a7   :  { %306 = vrot.lane.b32.xlu1 %v2258_v10, %s2133_s20  ;;  %304 = vrot.lane.b32.xlu0 %v2256_v9, %s2133_s20 }
 0x1a8   :  { %343 = vrot.lane.b32.xlu2 %v2256_v9, %s2134_s21 }
 0x1af   :  { %332 = vrot.lane.b32.xlu1 %v2258_v10, %s2135_s22  ;;  %265 = vrot.lane.b32.xlu0 %v2256_v9, %s2136_s23 }
 0x1b0   :  { %345 = vrot.lane.b32.xlu2 %v2258_v10, %s2134_s21 }
 0x1b7   :  { %319 = vrot.lane.b32.xlu1 %v2258_v10, %s2137_s24  ;;  %248 = vrot.lane.b32.xlu0 %v2272_v14, %s2138_s25 }
 0x1b8   :  { %330 = vrot.lane.b32.xlu2 %v2256_v9, %s2135_s22 }
 0x1bf   :  { %278 = vrot.lane.b32.xlu0 %v2256_v9, %s2139_s26  ;;  %289 = vrot.lane.b32.xlu1 %v2272_v14, %s2140_s27 }
 0x1c0   :  { %317 = vrot.lane.b32.xlu2 %v2256_v9, %s2137_s24 }
 0x1c7   :  { %334 = vrot.lane.b32.xlu0 %v2286_v18, %s2135_s22  ;;  %250 = vrot.lane.b32.xlu1 %v2256_v9, %s2138_s25 }
 0x1c8   :  { %263 = vrot.lane.b32.xlu2 %v2272_v14, %s2136_s23 }
 0x1cf   :  { %321 = vrot.lane.b32.xlu0 %v2286_v18, %s2137_s24  ;;  %347 = vrot.lane.b32.xlu1 %v2286_v18, %s2134_s21 }
 0x1d0   :  { %291 = vrot.lane.b32.xlu2 %v2256_v9, %s2140_s27 }
 0x1d7   :  { %293 = vrot.lane.b32.xlu0 %v2258_v10, %s2140_s27  ;;  %341 = vrot.lane.b32.xlu1 %v2272_v14, %s2134_s21 }
 0x1d8   :  { %276 = vrot.lane.b32.xlu2 %v2272_v14, %s2139_s26 }
 0x1df   :  { %269 = vrot.lane.b32.xlu0 %v2286_v18, %s2136_s23  ;;  %328 = vrot.lane.b32.xlu1 %v2272_v14, %s2135_s22 }
 0x1e0   :  { %308 = vrot.lane.b32.xlu2 %v2286_v18, %s2133_s20 }
 0x1e7   :  { %254 = vrot.lane.b32.xlu0 %v2286_v18, %s2138_s25  ;;  %315 = vrot.lane.b32.xlu1 %v2272_v14, %s2137_s24 }
 0x1e8   :  { %302 = vrot.lane.b32.xlu2 %v2272_v14, %s2133_s20 }
 0x1ef   :  { %280 = vrot.lane.b32.xlu1 %v2258_v10, %s2139_s26 }
 0x1f0   :  { %267 = vrot.lane.b32.xlu2 %v2258_v10, %s2136_s23 }
 0x1f7   :  { %282 = vrot.lane.b32.xlu1 %v2286_v18, %s2139_s26 }
 0x1f8   :  { %252 = vrot.lane.b32.xlu2 %v2258_v10, %s2138_s25 }
 0x1ff   :  { %590 = vperm.xlu1 %2041, %v1966_v19  }
 0x200   :  { %295 = vrot.lane.b32.xlu2 %v2286_v18, %s2140_s27 }
 0x202   :  { %v2331_v21 = vpop.permute.xlu2 %343 }
 0x207   :  { %599 = vperm.xlu1 %2041, %v1967_v22  }
 0x20a   :  { %v2344_v25 = vpop.permute.xlu2 %345 }
 0x20b   :  { %v351_v26 = vsel %vm349_vm5, %v2331_v21, %v2344_v25 }
 0x20c   :  { %v456_v27 = vmul.f32 %v2342_v24, %v351_v26  ;;  %v2457_v26 = vld [vmem:[%s3582_s1 + $0x70] sm:$0xff] }
 0x20e   :  { %v469_v28 = vpack.c.bf16 %v456_v27, %v456_v27 }
 0x210   :  { %v481_v29 = vsel %vm476_vm6, %v469_v28, 0 }
 0x211   :  { %507 = vmatpush.bf16.msrb.mxu2 %v481_v29 }
 0x212   :  { %v2352_v30 = vpop.permute.xlu2 %330 }
 0x219   :  { %v307_v31 = vpop.permute.xlu1 %306  ;;  %v2354_v32 = vpop.permute.xlu0 %304 }
 0x21a   :  { %v2356_v33 = vpop.permute.xlu2 %317  ;;  %v312_v36 = vsel %vm310_vm7, %v2354_v32, %v307_v31 }
 0x21b   :  { %v383_v38 = vrot.slane %v312_v36, 4 }
 0x21d   :  { %v412_v44 = vsel %vm402_vm9, %v2256_v9, %v383_v38 }
 0x21e   :  { %v448_v50 = vmul.f32 %v2378_v45, %v412_v44 }
 0x221   :  { %v333_v34 = vpop.permute.xlu1 %332  ;;  %v2359_v35 = vpop.permute.xlu0 %265 }
 0x222   :  { %v2364_v37 = vpop.permute.xlu2 %263  ;;  %v338_v39 = vsel %vm336_vm8, %v2352_v30, %v333_v34 }
 0x223   :  { %v395_v40 = vrot.slane %v338_v39, 4  ;;  %v274_v58 = vsel %vm271_vm12, %v2364_v37, %v2359_v35  ;;  %v2475_v39 = vld [vmem:[%s3582_s1 + $0x80] sm:$0xf] }
 0x224   :  { %v359_v60 = vrot.slane %v274_v58, 4 }
 0x229   :  { %v320_v42 = vpop.permute.xlu1 %319  ;;  %v2371_v43 = vpop.permute.xlu0 %248 }
 0x22a   :  { %v325_v47 = vsel %vm323_vm10, %v2356_v33, %v320_v42  ;;  %v2388_v48 = vpop.permute.xlu2 %291 }
 0x22b   :  { %v416_v49 = vsel %vm402_vm9, %v325_v47, %v395_v40  ;;  %v2480_v40 = vld [vmem:[%s3582_s1 + $0x98] sm:$0xf] }
 0x22c   :  { %v452_v51 = vmul.f32 %v2383_v46, %v416_v49 }
 0x22e   :  { %v465_v52 = vpack.c.bf16 %v452_v51, %v448_v50 }
 0x230   :  { %508 = vmatpush.bf16.msrb.mxu2 %v465_v52 }
 0x231   :  { %v2394_v53 = vpop.permute.xlu0 %278  ;;  %v2396_v54 = vpop.permute.xlu1 %289 }
 0x232   :  { %v300_v55 = vsel %vm297_vm11, %v2396_v54, %v2388_v48  ;;  %v2402_v56 = vpop.permute.xlu2 %276 }
 0x233   :  { %v371_v57 = vrot.slane %v300_v55, 4  ;;  %v287_v59 = vsel %vm284_vm13, %v2402_v56, %v2394_v53 }
 0x235   :  { %v408_v61 = vsel %vm402_vm9, %v287_v59, %v371_v57 }
 0x236   :  { %v444_v6 = vmul.f32 %v2426_v1, %v408_v61 }
 0x239   :  { %v335_v62 = vpop.permute.xlu0 %334  ;;  %v2416_v63 = vpop.permute.xlu1 %250 }
 0x23a   :  { %v261_v2 = vsel %vm258_vm14, %v2371_v43, %v2416_v63  ;;  %v309_v4 = vpop.permute.xlu2 %308  ;;  %v337_v7 = vsel %vm336_vm8, %v333_v34, %v335_v62 }
 0x23b   :  { %v404_v3 = vsel %vm402_vm9, %v261_v2, %v359_v60  ;;  %v311_v8 = vsel %vm310_vm7, %v307_v31, %v309_v4  ;;  %v396_v15 = vrot.slane %v337_v7, 4 }
 0x23c   :  { %v440_v5 = vmul.f32 %v2421_v0, %v404_v3  ;;  %v384_v16 = vrot.slane %v311_v8, 4 }
 0x23e   :  { %v461_v11 = vpack.c.bf16 %v444_v6, %v440_v5  ;;  %v413_v29 = vsel %vm402_vm9, %v2258_v10, %v384_v16 }
 0x240   :  { %509 = vmatpush.bf16.msrb.mxu2 %v461_v11 }
 0x241   :  { %v322_v17 = vpop.permute.xlu0 %321  ;;  %v348_v19 = vpop.permute.xlu1 %347 }
 0x242   :  { %v324_v20 = vsel %vm323_vm10, %v320_v42, %v322_v17  ;;  %v350_v22 = vsel %vm349_vm5, %v2344_v25, %v348_v19  ;;  %v303_v34 = vpop.permute.xlu2 %302  ;;  %v2468_v25 = vld [vmem:[%s3582_s1 + $0x50] sm:$0xff] }
 0x243   :  { %v417_v27 = vsel %vm402_vm9, %v324_v20, %v396_v15  ;;  %v457_v28 = vmul.f32 %v2442_v12, %v350_v22  ;;  %1963 = vmatmul.msk.bf16.vlgmr.msrb.gmra.mxu2 %vm3591_vm15, %v2447_v13  ;;  %v449_v42 = vmul.f32 %v2468_v25, %v413_v29  ;;  %v314_v3 = vsel %vm310_vm7, %v309_v4, %v303_v34  ;;  %v2519_v22 = vld [vmem:[%s3582_s1 + $0x58] sm:$0xff] }
 0x244   :  { %v453_v36 = vmul.f32 %v2457_v26, %v417_v27  ;;  %v385_v6 = vrot.slane %v314_v3, 4  ;;  %v2524_v27 = vld [vmem:[%s3582_s1 + $0x78] sm:$0xff] }
 0x245   :  { %v470_v31 = vpack.c.bf16 %v457_v28, %v457_v28 }
 0x246   :  { %v466_v50 = vpack.c.bf16 %v453_v36, %v449_v42 }
 0x247   :  { %v484_v38 = vsel %vm476_vm6, %v470_v31, 0 }
 0x248   :  { %520 = vmatpush.bf16.msra.mxu2 %v484_v38 }
 0x249   :  { %v342_v44 = vpop.permute.xlu1 %341  ;;  %v294_v58 = vpop.permute.xlu0 %293 }
 0x24a   :  { %v352_v47 = vsel %vm349_vm5, %v342_v44, %v2331_v21  ;;  %v353_v49 = vsel %vm349_vm5, %v348_v19, %v342_v44  ;;  %v268_v59 = vpop.permute.xlu2 %267  ;;  %v313_v21 = vsel %vm310_vm7, %v303_v34, %v2354_v32  ;;  %v2507_v32 = vld [vmem:[%s3582_s1 + $0x40] sm:$0xff] }
 0x24b   :  { %v455_v51 = vmul.f32 %v2475_v39, %v352_v47  ;;  %v458_v52 = vmul.f32 %v2480_v40, %v353_v49  ;;  %v382_v5 = vrot.slane %v313_v21, 4  ;;  %v273_v38 = vsel %vm271_vm12, %v2359_v35, %v268_v59 }
 0x24c   :  { %521 = vmatpush.bf16.msra.mxu2 %v466_v50 }
 0x24d   :  { %v468_v55 = vpack.c.bf16 %v455_v51, %v455_v51  ;;  %v471_v57 = vpack.c.bf16 %v458_v52, %v458_v52  ;;  %v411_v15 = vsel %vm402_vm9, %v2272_v14, %v382_v5  ;;  %v360_v51 = vrot.slane %v273_v38, 4  ;;  %v2549_v52 = vld [vmem:[%s3582_s1 + $0x10] sm:$0xff] }
 0x24e   :  { %v447_v36 = vmul.f32 %v2507_v32, %v411_v15 }
 0x24f   :  { %v478_v60 = vsel %vm476_vm6, %v468_v55, 0  ;;  %v487_v61 = vsel %vm476_vm6, %v471_v57, 0 }
 0x250   :  { %494 = vmatpush.bf16.msrb.mxu0 %v478_v60  ;;  %533 = vmatpush.bf16.msrb.mxu3 %v487_v61 }
 0x251   :  { %v329_v2 = vpop.permute.xlu1 %328  ;;  %v270_v11 = vpop.permute.xlu0 %269 }
 0x252   :  { %v339_v7 = vsel %vm336_vm8, %v329_v2, %v2352_v30  ;;  %v340_v8 = vsel %vm336_vm8, %v335_v62, %v329_v2  ;;  %v253_v19 = vpop.permute.xlu2 %252  ;;  %v2512_v30 = vld [vmem:[%s3582_s1 + $0x60] sm:$0xff]  ;;  %v414_v62 = vsel %vm402_vm9, %v2286_v18, %v385_v6  ;;  %v272_v2 = vsel %vm271_vm12, %v268_v59, %v270_v11 }
 0x253   :  { %v394_v16 = vrot.slane %v339_v7, 4  ;;  %v397_v4 = vrot.slane %v340_v8, 4  ;;  %v450_v44 = vmul.f32 %v2519_v22, %v414_v62  ;;  %v275_v3 = vsel %vm271_vm12, %v270_v11, %v2364_v37  ;;  %v2593_v62 = vld [vmem:[%s3582_s1 + $0x18] sm:$0xff] }
 0x254   :  { %v358_v37 = vrot.slane %v275_v3, 4  ;;  %v361_v11 = vrot.slane %v272_v2, 4 }
 0x259   :  { %v316_v20 = vpop.permute.xlu1 %315 }
 0x25a   :  { %v326_v28 = vsel %vm323_vm10, %v316_v20, %v2356_v33  ;;  %v327_v29 = vsel %vm323_vm10, %v322_v17, %v316_v20  ;;  %v299_v33 = vsel %vm297_vm11, %v2388_v48, %v294_v58  ;;  %v260_v17 = vsel %vm258_vm14, %v2416_v63, %v253_v19  ;;  %v2555_v48 = vld [vmem:[%s3582_s1 + $0x30] sm:$0xff]  ;;  %v255_v63 = vpop.permute.xlu0 %254  ;;  %v296_v61 = vpop.permute.xlu2 %295 }
 0x25b   :  { %v415_v31 = vsel %vm402_vm9, %v326_v28, %v394_v16  ;;  %v418_v34 = vsel %vm402_vm9, %v327_v29, %v397_v4  ;;  %v372_v35 = vrot.slane %v299_v33, 4  ;;  %v405_v55 = vsel %vm402_vm9, %v260_v17, %v360_v51  ;;  %v2581_v16 = vld [vmem:[%s3582_s1] sm:$0xff]  ;;  %v2598_v28 = vld [vmem:[%s3582_s1 + $0x38] sm:$0xff]  ;;  %v2619_v51 = vpop.f32.mrf.mxu0 }
 0x25c   :  { %v451_v42 = vmul.f32 %v2512_v30, %v415_v31  ;;  %v454_v47 = vmul.f32 %v2524_v27, %v418_v34  ;;  %v441_v5 = vmul.f32 %v2549_v52, %v405_v55  ;;  %v259_v7 = vsel %vm258_vm14, %v253_v19, %v255_v63 }
 0x25d   :  { %v298_v8 = vsel %vm297_vm11, %v294_v58, %v296_v61  ;;  %v301_v59 = vsel %vm297_vm11, %v296_v61, %v2396_v54  ;;  %v2588_v54 = vld [vmem:[%s3582_s1 + $0x20] sm:$0xff] }
 0x25e   :  { %v464_v49 = vpack.c.bf16 %v451_v42, %v447_v36  ;;  %v467_v50 = vpack.c.bf16 %v454_v47, %v450_v44  ;;  %v370_v19 = vrot.slane %v301_v59, 4  ;;  %v373_v20 = vrot.slane %v298_v8, 4 }
 0x260   :  { %495 = vmatpush.bf16.msrb.mxu0 %v464_v49  ;;  %534 = vmatpush.bf16.msrb.mxu3 %v467_v50 }
 0x261   :  { %v281_v57 = vpop.permute.xlu1 %280 }
 0x262   :  { %v286_v60 = vsel %vm284_vm13, %v2394_v53, %v281_v57  ;;  %v262_v53 = vsel %vm258_vm14, %v255_v63, %v2371_v43  ;;  %v406_v43 = vsel %vm402_vm9, %v259_v7, %v361_v11 }
 0x263   :  { %v409_v21 = vsel %vm402_vm9, %v286_v60, %v372_v35  ;;  %v403_v4 = vsel %vm402_vm9, %v262_v53, %v358_v37  ;;  %v442_v44 = vmul.f32 %v2593_v62, %v406_v43  ;;  %v2621_v35 = vpop.f32.mrf.mxu3 }
 0x264   :  { %v445_v6 = vmul.f32 %v2555_v48, %v409_v21  ;;  %v439_v38 = vmul.f32 %v2581_v16, %v403_v4 }
 0x266   :  { %v462_v15 = vpack.c.bf16 %v445_v6, %v441_v5 }
 0x268   :  { %522 = vmatpush.bf16.msra.mxu2 %v462_v15 }
 0x269   :  { %v283_v58 = vpop.permute.xlu1 %282 }
 0x26a   :  { %v285_v29 = vsel %vm284_vm13, %v281_v57, %v283_v58  ;;  %v288_v31 = vsel %vm284_vm13, %v283_v58, %v2402_v56  ;;  %v2617_v56 = vpop.f32.mrf.mxu2 }
 0x26b   :  { %v407_v34 = vsel %vm402_vm9, %v288_v31, %v370_v19  ;;  %v410_v36 = vsel %vm402_vm9, %v285_v29, %v373_v20  ;;  %1964 = vmatmul.msk.bf16.vlgmr.msra.gmra.mxu2 %vm3591_vm15, %v2447_v13 }
 0x26c   :  { %v443_v42 = vmul.f32 %v2588_v54, %v407_v34  ;;  %v446_v47 = vmul.f32 %v2598_v28, %v410_v36 }
 0x26e   :  { %v460_v33 = vpack.c.bf16 %v443_v42, %v439_v38  ;;  %v463_v17 = vpack.c.bf16 %v446_v47, %v442_v44 }
 0x270   :  { %496 = vmatpush.bf16.msrb.mxu0 %v460_v33  ;;  %535 = vmatpush.bf16.msrb.mxu3 %v463_v17 }
 0x273   :  { %1962 = vmatmul.msk.bf16.vlgmr.msrb.gmra.mxu0 %vm3591_vm15, %v2447_v13  ;;  %1965 = vmatmul.msk.bf16.vlgmr.msrb.gmra.mxu3 %vm3591_vm15, %v2447_v13 }
 0x2c6   :  { %v511_v49 = vpop.f32.mrf.mxu2 }
 0x2c7   :  { %v546_v63 = vsel %vm402_vm9, %v511_v49, 0.0 }
 0x2ce   :  { %v513_v50 = vpop.f32.mrf.mxu2 }
 0x2ee   :  { %v524_v55 = vpop.f32.mrf.mxu2 }
 0x2ef   :  { %v548_v21 = vsel %vm402_vm9, %v524_v55, 0.0 }
 0x2f0   :  { %v498_v57 = vpop.f32.mrf.mxu0 }
 0x2f1   :  { %v545_v60 = vsel %vm402_vm9, %v498_v57, 0.0 }
 0x2f2   :  { %v547_v61 = vadd.f32 %v546_v63, %v545_v60 }
 0x2f4   :  { %v549_v13 = vadd.f32 %v548_v21, %v547_v61 }
 0x2f6   :  { %v526_v2 = vpop.f32.mrf.mxu2  ;;  %v537_v3 = vpop.f32.mrf.mxu3 }
 0x2f7   :  { %v550_v5 = vsel %vm402_vm9, %v537_v3, 0.0 }
 0x2f8   :  { %v500_v6 = vpop.f32.mrf.mxu0  ;;  %v551_v7 = vadd.f32 %v550_v5, %v549_v13 }
 0x2fa   :  { %552 = vadd.xlane.f32.xlu2 %v551_v7 }
 0x2fe   :  { %v539_v53 = vpop.f32.mrf.mxu3 }
 0x36d   :  { %v553_v8 = vpop.xlane.xlu2 %552 }
 0x36e   :  { %v554_v59 = vmul.f32 %v553_v8, %v2252_v41  ;;  %v616_v8 = vrot.slane %v2258_v10, 4 }
 0x370   :  { %v555_v15 = vsub.f32 %v498_v57, %v554_v59  ;;  %v556_v37 = vsub.f32 %v511_v49, %v554_v59  ;;  %v557_v11 = vsub.f32 %v524_v55, %v554_v59  ;;  %v558_v4 = vsub.f32 %v537_v3, %v554_v59  ;;  %v591_v57 = vpop.permute.xlu1 %590 }
 0x371   :  { %v617_v59 = vrot.slane %v2286_v18, 4 }
 0x372   :  { %v559_v43 = vmul.f32 %v555_v15, %v555_v15  ;;  %v560_v19 = vmul.f32 %v556_v37, %v556_v37  ;;  %v561_v20 = vmul.f32 %v557_v11, %v557_v11  ;;  %v562_v58 = vmul.f32 %v558_v4, %v558_v4 }
 0x374   :  { %v563_v29 = vsel %vm402_vm9, %v559_v43, 0.0  ;;  %v564_v31 = vsel %vm402_vm9, %v560_v19, 0.0  ;;  %v566_v36 = vsel %vm402_vm9, %v561_v20, 0.0  ;;  %v568_v42 = vsel %vm402_vm9, %v562_v58, 0.0 }
 0x375   :  { %v565_v34 = vadd.f32 %v564_v31, %v563_v29  ;;  %v615_v58 = vrot.slane %v2256_v9, 4 }
 0x377   :  { %v567_v38 = vadd.f32 %v566_v36, %v565_v34 }
 0x378   :  { %v600_v6 = vpop.permute.xlu1 %599 }
 0x379   :  { %v569_v44 = vadd.f32 %v568_v42, %v567_v38 }
 0x37b   :  { %570 = vadd.xlane.f32.xlu0 %v569_v44 }
 0x3ee   :  { %v571_v47 = vpop.xlane.xlu0 %570 }
 0x3ef   :  { %v572_v33 = vmul.f32 %v571_v47, %v2252_v41 }
 0x3f1   :  { %v573_v17 = vadd.f32 1e-05, %v572_v33 }
 0x3f3   :  { %2051 = vrsqrt.f32 %v573_v17  ;;  %vm580_vm2 = vweird.f32 %v573_v17 }
 0x3f9   :  { %v2052_v49 = vpop.eup %2051 }
 0x3fa   :  { %v575_v50 = vmul.f32 %v2052_v49, %v573_v17  ;;  %vm581_vm1 = vweird.f32 %v2052_v49 }
 0x3fb   :  { %vm582_vm3 = vmor %vm580_vm2, %vm581_vm1 }
 0x3fc   :  { %v576_v55 = vmul.f32 %v2052_v49, %v575_v50 }
 0x3fe   :  { %v577_v63 = vmul.f32 0.5, %v576_v55 }
 0x400   :  { %v578_v60 = vsub.f32 1.5, %v577_v63 }
 0x402   :  { %v579_v61 = vmul.f32 %v2052_v49, %v578_v60 }
 0x404   :  { %v583_v21 = vsel %vm582_vm3, %v2052_v49, %v579_v61 }
 0x405   :  { %v586_v2 = vmul.f32 %v583_v21, %v557_v11  ;;  %v587_v3 = vmul.f32 %v583_v21, %v558_v4  ;;  %v585_v20 = vmul.f32 %v583_v21, %v556_v37  ;;  %v584_v29 = vmul.f32 %v583_v21, %v555_v15 }
 0x406   :  { %v614_v15 = vrot.slane %v2272_v14, 4  ;;  %v2725_v14 = vpop.f32.mrf.mxu1 }
 0x407   :  { %v595_v13 = vmul.f32 %v591_v57, %v586_v2  ;;  %v596_v5 = vmul.f32 %v591_v57, %v587_v3  ;;  %v594_v10 = vmul.f32 %v591_v57, %v585_v20  ;;  %v593_v34 = vmul.f32 %v591_v57, %v584_v29 }
 0x408   :  { %v132_v44 = vadd.f32 %v2725_v14, %v2619_v51 }
 0x409   :  { %v2633_v7 = vadd.f32 %v600_v6, %v595_v13  ;;  %v2635_v53 = vadd.f32 %v600_v6, %v596_v5  ;;  %v2655_v18 = vadd.f32 %v600_v6, %v594_v10  ;;  %v2675_v36 = vadd.f32 %v600_v6, %v593_v34 }
 0x40a   :  { %v133_v47 = vadd.f32 %v132_v44, %v2617_v56 }
 0x40b   :  { %v608_v43 = vmax.f32 %v2633_v7, 0.0  ;;  %v609_v19 = vmax.f32 %v2635_v53, 0.0  ;;  %v607_v37 = vmax.f32 %v2655_v18, 0.0  ;;  %v606_v9 = vmax.f32 %v2675_v36, 0.0 }
 0x40c   :  { %v134_v33 = vadd.f32 %v133_v47, %v2621_v35 }
 0x40d   :  { %v2643_v11 = vadd.f32 %v616_v8, %v608_v43  ;;  %v2647_v4 = vadd.f32 %v617_v59, %v609_v19  ;;  %v2667_v31 = vadd.f32 %v615_v58, %v607_v37  ;;  %v2687_v38 = vadd.f32 %v614_v15, %v606_v9 }
 0x40f   :  { %680 = vrot.lane.b32.xlu2 %v2647_v4, %s2133_s20  ;;  %702 = vrot.lane.b32.xlu0 %v2643_v11, %s2135_s22 }
 0x410   :  { %714 = vrot.lane.b32.xlu1 %v2643_v11, %s2134_s21 }
 0x417   :  { %690 = vrot.lane.b32.xlu2 %v2643_v11, %s2137_s24  ;;  %692 = vrot.lane.b32.xlu0 %v2647_v4, %s2137_s24 }
 0x418   :  { %716 = vrot.lane.b32.xlu1 %v2647_v4, %s2134_s21 }
 0x41f   :  { %640 = vrot.lane.b32.xlu0 %v2667_v31, %s2136_s23  ;;  %712 = vrot.lane.b32.xlu2 %v2667_v31, %s2134_s21 }
 0x420   :  { %678 = vrot.lane.b32.xlu1 %v2643_v11, %s2133_s20 }
 0x427   :  { %666 = vrot.lane.b32.xlu0 %v2643_v11, %s2140_s27  ;;  %664 = vrot.lane.b32.xlu2 %v2667_v31, %s2140_s27 }
 0x428   :  { %704 = vrot.lane.b32.xlu1 %v2647_v4, %s2135_s22 }
 0x42f   :  { %700 = vrot.lane.b32.xlu0 %v2667_v31, %s2135_s22  ;;  %686 = vrot.lane.b32.xlu2 %v2687_v38, %s2137_s24 }
 0x430   :  { %710 = vrot.lane.b32.xlu1 %v2687_v38, %s2134_s21 }
 0x437   :  { %644 = vrot.lane.b32.xlu0 %v2647_v4, %s2136_s23  ;;  %630 = vrot.lane.b32.xlu2 %v2643_v11, %s2138_s25 }
 0x438   :  { %674 = vrot.lane.b32.xlu1 %v2687_v38, %s2133_s20 }
 0x43f   :  { %668 = vrot.lane.b32.xlu0 %v2647_v4, %s2140_s27  ;;  %654 = vrot.lane.b32.xlu2 %v2643_v11, %s2139_s26 }
 0x440   :  { %698 = vrot.lane.b32.xlu1 %v2687_v38, %s2135_s22 }
 0x447   :  { %638 = vrot.lane.b32.xlu0 %v2687_v38, %s2136_s23  ;;  %632 = vrot.lane.b32.xlu2 %v2647_v4, %s2138_s25 }
 0x448   :  { %642 = vrot.lane.b32.xlu1 %v2643_v11, %s2136_s23 }
 0x44f   :  { %626 = vrot.lane.b32.xlu0 %v2687_v38, %s2138_s25  ;;  %662 = vrot.lane.b32.xlu2 %v2687_v38, %s2140_s27 }
 0x450   :  { %676 = vrot.lane.b32.xlu1 %v2667_v31, %s2133_s20 }
 0x458   :  { %628 = vrot.lane.b32.xlu1 %v2667_v31, %s2138_s25 }
 0x460   :  { %652 = vrot.lane.b32.xlu1 %v2667_v31, %s2139_s26 }
 0x468   :  { %688 = vrot.lane.b32.xlu1 %v2667_v31, %s2137_s24 }
 0x469   :  { %v681_v42 = vpop.permute.xlu2 %680 }
 0x470   :  { %656 = vrot.lane.b32.xlu1 %v2647_v4, %s2139_s26 }
 0x471   :  { %v2733_v17 = vpop.permute.xlu2 %690 }
 0x478   :  { %650 = vrot.lane.b32.xlu1 %v2687_v38, %s2139_s26 }
 0x479   :  { %135 = vadd.xlane.f32.xlu0 %v134_v33  ;;  %v713_v49 = vpop.permute.xlu2 %712 }
 0x481   :  { %v2744_v13 = vpop.permute.xlu0 %702 }
 0x482   :  { %v715_v50 = vpop.permute.xlu1 %714 }
 0x483   :  { %v719_v55 = vsel %vm349_vm5, %v713_v49, %v715_v50 }
 0x484   :  { %v803_v57 = vmul.f32 %v719_v55, %v2342_v24 }
 0x486   :  { %v817_v63 = vpack.c.bf16 %v803_v57, %v803_v57 }
 0x488   :  { %v827_v60 = vsel %vm476_vm6, %v817_v63, 0 }
 0x489   :  { %853 = vmatpush.bf16.msrb.mxu1 %v827_v60  ;;  %v693_v59 = vpop.permute.xlu0 %692 }
 0x48a   :  { %v717_v61 = vpop.permute.xlu1 %716  ;;  %v694_v29 = vsel %vm323_vm10, %v2733_v17, %v693_v59 }
 0x48b   :  { %v718_v21 = vsel %vm349_vm5, %v715_v50, %v717_v61 }
 0x48c   :  { %v804_v2 = vmul.f32 %v718_v21, %v2442_v12 }
 0x48e   :  { %v818_v3 = vpack.c.bf16 %v804_v2, %v804_v2 }
 0x490   :  { %v830_v5 = vsel %vm476_vm6, %v818_v3, 0 }
 0x491   :  { %866 = vmatpush.bf16.msrb.mxu2 %v830_v5  ;;  %v2766_v21 = vpop.permute.xlu0 %640 }
 0x492   :  { %v679_v6 = vpop.permute.xlu1 %678 }
 0x493   :  { %v682_v24 = vsel %vm310_vm7, %v679_v6, %v681_v42 }
 0x494   :  { %v752_v8 = vrot.slane %v682_v24, 4 }
 0x496   :  { %v780_v12 = vsel %vm402_vm9, %v2643_v11, %v752_v8 }
 0x497   :  { %v796_v15 = vmul.f32 %v780_v12, %v2468_v25  ;;  %v2768_v25 = vpop.permute.xlu2 %664 }
 0x49a   :  { %v705_v20 = vpop.permute.xlu1 %704 }
 0x49b   :  { %v706_v10 = vsel %vm336_vm8, %v2744_v13, %v705_v20 }
 0x49c   :  { %v764_v58 = vrot.slane %v706_v10, 4 }
 0x49e   :  { %v784_v34 = vsel %vm402_vm9, %v694_v29, %v764_v58 }
 0x49f   :  { %v800_v44 = vmul.f32 %v784_v34, %v2457_v26  ;;  %v687_v5 = vpop.permute.xlu2 %686 }
 0x4a0   :  { %v697_v12 = vsel %vm323_vm10, %v693_v59, %v687_v5 }
 0x4a1   :  { %v814_v47 = vpack.c.bf16 %v800_v44, %v796_v15 }
 0x4a2   :  { %v711_v33 = vpop.permute.xlu1 %710 }
 0x4a3   :  { %v720_v50 = vsel %vm349_vm5, %v711_v33, %v713_v49  ;;  %v721_v55 = vsel %vm349_vm5, %v717_v61, %v711_v33  ;;  %867 = vmatpush.bf16.msrb.mxu2 %v814_v47 }
 0x4a4   :  { %v802_v11 = vmul.f32 %v720_v50, %v2475_v39  ;;  %v805_v57 = vmul.f32 %v721_v55, %v2480_v40  ;;  %v667_v39 = vpop.permute.xlu0 %666 }
 0x4a5   :  { %v671_v59 = vsel %vm297_vm11, %v2768_v25, %v667_v39 }
 0x4a6   :  { %v816_v63 = vpack.c.bf16 %v802_v11, %v802_v11  ;;  %v819_v60 = vpack.c.bf16 %v805_v57, %v805_v57  ;;  %v740_v57 = vrot.slane %v671_v59, 4 }
 0x4a7   :  { %v631_v33 = vpop.permute.xlu2 %630 }
 0x4a8   :  { %v824_v26 = vsel %vm476_vm6, %v816_v63, 0  ;;  %v833_v2 = vsel %vm476_vm6, %v819_v60, 0 }
 0x4a9   :  { %840 = vmatpush.bf16.msra.mxu0 %v824_v26  ;;  %879 = vmatpush.bf16.msra.mxu3 %v833_v2 }
 0x4aa   :  { %v675_v49 = vpop.permute.xlu1 %674 }
 0x4ab   :  { %v685_v61 = vsel %vm310_vm7, %v681_v42, %v675_v49 }
 0x4ac   :  { %v753_v3 = vrot.slane %v685_v61, 4  ;;  %v701_v44 = vpop.permute.xlu0 %700 }
 0x4ae   :  { %v781_v8 = vsel %vm402_vm9, %v2647_v4, %v753_v3 }
 0x4af   :  { %v797_v29 = vmul.f32 %v781_v8, %v2519_v22  ;;  %v655_v22 = vpop.permute.xlu2 %654 }
 0x4b2   :  { %v699_v40 = vpop.permute.xlu1 %698 }
 0x4b3   :  { %v709_v24 = vsel %vm336_vm8, %v705_v20, %v699_v40 }
 0x4b4   :  { %v765_v10 = vrot.slane %v709_v24, 4  ;;  %v645_v20 = vpop.permute.xlu0 %644 }
 0x4b6   :  { %v785_v58 = vsel %vm402_vm9, %v697_v12, %v765_v10 }
 0x4b7   :  { %v801_v42 = vmul.f32 %v785_v58, %v2524_v27  ;;  %v707_v58 = vsel %vm336_vm8, %v701_v44, %v2744_v13 }
 0x4b9   :  { %v815_v34 = vpack.c.bf16 %v801_v42, %v797_v29  ;;  %v633_v29 = vpop.permute.xlu2 %632 }
 0x4ba   :  { %v643_v15 = vpop.permute.xlu1 %642 }
 0x4bb   :  { %880 = vmatpush.bf16.msra.mxu3 %v815_v34  ;;  %v647_v4 = vsel %vm271_vm12, %v2766_v21, %v643_v15  ;;  %v2815_v34 = vld [vmem:[%s3584_s3 + $0x2] sm:$0x3] }
 0x4bc   :  { %v669_v55 = vpop.permute.xlu0 %668  ;;  %v728_v11 = vrot.slane %v647_v4, 4 }
 0x4c2   :  { %v677_v47 = vpop.permute.xlu1 %676 }
 0x4c3   :  { %v683_v26 = vsel %vm310_vm7, %v677_v47, %v679_v6  ;;  %v684_v2 = vsel %vm310_vm7, %v675_v49, %v677_v47  ;;  %v708_v6 = vsel %vm336_vm8, %v699_v40, %v701_v44  ;;  %v646_v44 = vsel %vm271_vm12, %v643_v15, %v645_v20 }
 0x4c4   :  { %v750_v10 = vrot.slane %v684_v2, 4  ;;  %v751_v12 = vrot.slane %v683_v26, 4  ;;  %v639_v42 = vpop.permute.xlu0 %638  ;;  %v762_v47 = vrot.slane %v708_v6, 4  ;;  %v729_v26 = vrot.slane %v646_v44, 4 }
 0x4c6   :  { %v778_v13 = vsel %vm402_vm9, %v2687_v38, %v750_v10  ;;  %v779_v40 = vsel %vm402_vm9, %v2667_v31, %v751_v12 }
 0x4c7   :  { %v794_v38 = vmul.f32 %v778_v13, %v2507_v32  ;;  %v795_v15 = vmul.f32 %v779_v40, %v2378_v45  ;;  %v663_v32 = vpop.permute.xlu2 %662 }
 0x4ca   :  { %v2783_v50 = vpop.permute.xlu1 %628 }
 0x4cb   :  { %v635_v27 = vsel %vm258_vm14, %v2783_v50, %v631_v33 }
 0x4cc   :  { %v772_v63 = vsel %vm402_vm9, %v635_v27, %v728_v11 }
 0x4cd   :  { %v788_v24 = vmul.f32 %v772_v63, %v2549_v52  ;;  %v123_v52 = vld [vmem:[%s3586_s5 + $0x8] sm:$0xff] }
 0x4ce   :  { %211 = vperm.xlu0 %2042, %v123_v52  }
 0x4d2   :  { %v2795_v60 = vpop.permute.xlu1 %652 }
 0x4d3   :  { %v659_v61 = vsel %vm284_vm13, %v2795_v60, %v655_v22 }
 0x4d4   :  { %v776_v3 = vsel %vm402_vm9, %v659_v61, %v740_v57  ;;  %v634_v61 = vsel %vm258_vm14, %v631_v33, %v633_v29  ;;  %v648_v33 = vsel %vm271_vm12, %v639_v42, %v2766_v21 }
 0x4d5   :  { %v792_v8 = vmul.f32 %v776_v3, %v2555_v48  ;;  %v763_v48 = vrot.slane %v707_v58, 4  ;;  %v672_v58 = vsel %vm297_vm11, %v663_v32, %v2768_v25 }
 0x4d7   :  { %v810_v49 = vpack.c.bf16 %v792_v8, %v788_v24  ;;  %v627_v8 = vpop.permute.xlu0 %626 }
 0x4d9   :  { %868 = vmatpush.bf16.msrb.mxu2 %v810_v49  ;;  %v636_v49 = vsel %vm258_vm14, %v627_v8, %v2783_v50 }
 0x4da   :  { %v689_v4 = vpop.permute.xlu1 %688 }
 0x4db   :  { %v695_v59 = vsel %vm323_vm10, %v689_v4, %v2733_v17  ;;  %v696_v27 = vsel %vm323_vm10, %v687_v5, %v689_v4  ;;  %v670_v17 = vsel %vm297_vm11, %v667_v39, %v669_v55 }
 0x4dc   :  { %v782_v11 = vsel %vm402_vm9, %v696_v27, %v762_v47  ;;  %v783_v57 = vsel %vm402_vm9, %v695_v59, %v763_v48  ;;  %1971 = vmatmul.msk.bf16.vlgmr.msrb.gmra.mxu2 %vm3591_vm15, %v2815_v34  ;;  %v741_v3 = vrot.slane %v670_v17, 4 }
 0x4dd   :  { %v798_v31 = vmul.f32 %v782_v11, %v2512_v30  ;;  %v799_v63 = vmul.f32 %v783_v57, %v2383_v46  ;;  %v773_v30 = vsel %vm402_vm9, %v634_v61, %v729_v26  ;;  %v649_v46 = vsel %vm271_vm12, %v645_v20, %v639_v42 }
 0x4de   :  { %v789_v12 = vmul.f32 %v773_v30, %v2593_v62  ;;  %v673_v20 = vsel %vm297_vm11, %v669_v55, %v663_v32  ;;  %v726_v6 = vrot.slane %v649_v46, 4  ;;  %v727_v42 = vrot.slane %v648_v33, 4 }
 0x4df   :  { %v812_v5 = vpack.c.bf16 %v798_v31, %v794_v38  ;;  %v813_v2 = vpack.c.bf16 %v799_v63, %v795_v15  ;;  %v739_v62 = vrot.slane %v672_v58, 4  ;;  %v738_v52 = vrot.slane %v673_v20, 4  ;;  %v1973_v63 = vld [vmem:[%s3586_s5 + $0x40] sm:$0xff] }
 0x4e0   :  { %v771_v25 = vsel %vm402_vm9, %v636_v49, %v727_v42 }
 0x4e1   :  { %841 = vmatpush.bf16.msra.mxu0 %v812_v5  ;;  %854 = vmatpush.bf16.msrb.mxu1 %v813_v2  ;;  %v787_v59 = vmul.f32 %v771_v25, %v2421_v0 }
 0x4e2   :  { %v657_v24 = vpop.permute.xlu1 %656 }
 0x4e3   :  { %v658_v45 = vsel %vm284_vm13, %v655_v22, %v657_v24  ;;  %v637_v22 = vsel %vm258_vm14, %v633_v29, %v627_v8 }
 0x4e4   :  { %v777_v39 = vsel %vm402_vm9, %v658_v45, %v741_v3 }
 0x4e5   :  { %v793_v10 = vmul.f32 %v777_v39, %v2598_v28  ;;  %v770_v28 = vsel %vm402_vm9, %v637_v22, %v726_v6 }
 0x4e6   :  { %v786_v47 = vmul.f32 %v770_v28, %v2581_v16 }
 0x4e7   :  { %v811_v21 = vpack.c.bf16 %v793_v10, %v789_v12  ;;  %v1974_v10 = vld [vmem:[%s3586_s5 + $0xe0] sm:$0xff] }
 0x4e9   :  { %881 = vmatpush.bf16.msra.mxu3 %v811_v21 }
 0x4ea   :  { %v651_v48 = vpop.permute.xlu1 %650 }
 0x4eb   :  { %v660_v29 = vsel %vm284_vm13, %v651_v48, %v2795_v60  ;;  %v661_v55 = vsel %vm284_vm13, %v657_v24, %v651_v48 }
 0x4ec   :  { %v774_v50 = vsel %vm402_vm9, %v661_v55, %v738_v52  ;;  %v775_v13 = vsel %vm402_vm9, %v660_v29, %v739_v62  ;;  %1972 = vmatmul.msk.bf16.vlgmr.msra.gmra.mxu3 %vm3591_vm15, %v2815_v34  ;;  %v136_v4 = vpop.xlane.xlu0 %135 }
 0x4ed   :  { %v790_v40 = vmul.f32 %v774_v50, %v2588_v54  ;;  %v145_v44 = vmul.f32 %v2252_v41, %v136_v4  ;;  %v791_v60 = vmul.f32 %v775_v13, %v2426_v1 }
 0x4ef   :  { %v2881_v27 = vsub.f32 %v2619_v51, %v145_v44  ;;  %v2884_v16 = vsub.f32 %v2725_v14, %v145_v44  ;;  %v808_v11 = vpack.c.bf16 %v790_v40, %v786_v47  ;;  %v809_v57 = vpack.c.bf16 %v791_v60, %v787_v59  ;;  %v1961_v51 = vld [vmem:[%s3586_s5 + $0xa8] sm:$0xff] }
 0x4f0   :  { %v2887_v31 = vsub.f32 %v2617_v56, %v145_v44  ;;  %v2890_v54 = vsub.f32 %v2621_v35, %v145_v44  ;;  %229 = vperm.xlu2 %2043, %v1961_v51  }
 0x4f1   :  { %842 = vmatpush.bf16.msra.mxu0 %v808_v11  ;;  %855 = vmatpush.bf16.msrb.mxu1 %v809_v57  ;;  %v158_v0 = vmul.f32 %v2881_v27, %v2881_v27  ;;  %v159_v1 = vmul.f32 %v2884_v16, %v2884_v16 }
 0x4f2   :  { %v160_v14 = vmul.f32 %v2887_v31, %v2887_v31  ;;  %v161_v35 = vmul.f32 %v2890_v54, %v2890_v54 }
 0x4f3   :  { %v167_v56 = vadd.f32 %v159_v1, %v158_v0 }
 0x4f4   :  { %1969 = vmatmul.msk.bf16.vlgmr.msra.gmra.mxu0 %vm3591_vm15, %v2815_v34  ;;  %1970 = vmatmul.msk.bf16.vlgmr.msrb.gmra.mxu1 %vm3591_vm15, %v2815_v34 }
 0x4f5   :  { %v168_v38 = vadd.f32 %v167_v56, %v160_v14 }
 0x4f7   :  { %v169_v15 = vadd.f32 %v168_v38, %v161_v35 }
 0x4f9   :  { %170 = vadd.xlane.f32.xlu1 %v169_v15 }
 0x512   :  { %936 = vperm.xlu1 %2041, %v1973_v63  }
 0x54a   :  { %v2917_v12 = vpop.permute.xlu2 %229 }
 0x55f   :  { %v870_v26 = vpop.f32.mrf.mxu2 }
 0x560   :  { %v894_v3 = vsel %vm402_vm9, %v870_v26, 0.0 }
 0x567   :  { %v872_v17 = vpop.f32.mrf.mxu2 }
 0x56c   :  { %v171_v4 = vpop.xlane.xlu1 %170 }
 0x56d   :  { %v173_v40 = vmul.f32 %v171_v4, %v2252_v41 }
 0x56f   :  { %v883_v5 = vpop.f32.mrf.mxu3  ;;  %v175_v44 = vadd.f32 1e-05, %v173_v40 }
 0x570   :  { %v896_v32 = vsel %vm402_vm9, %v883_v5, 0.0 }
 0x571   :  { %v844_v2 = vpop.f32.mrf.mxu0  ;;  %v857_v61 = vpop.f32.mrf.mxu1  ;;  %2053 = vrsqrt.f32 %v175_v44  ;;  %vm192_vm1 = vweird.f32 %v175_v44 }
 0x572   :  { %v891_v34 = vsel %vm402_vm9, %v844_v2, 0.0  ;;  %v892_v30 = vsel %vm402_vm9, %v857_v61, 0.0 }
 0x573   :  { %v893_v24 = vadd.f32 %v892_v30, %v891_v34 }
 0x575   :  { %v895_v8 = vadd.f32 %v894_v3, %v893_v24 }
 0x577   :  { %v885_v45 = vpop.f32.mrf.mxu3  ;;  %v897_v46 = vadd.f32 %v896_v32, %v895_v8  ;;  %v2054_v59 = vpop.eup %2053 }
 0x578   :  { %v187_v11 = vmul.f32 %v2054_v59, %v175_v44  ;;  %vm193_vm4 = vweird.f32 %v2054_v59 }
 0x579   :  { %v859_v39 = vpop.f32.mrf.mxu1  ;;  %898 = vadd.xlane.f32.xlu2 %v897_v46  ;;  %v846_v33 = vpop.f32.mrf.mxu0  ;;  %vm194_vm2 = vmor %vm192_vm1, %vm193_vm4 }
 0x57a   :  { %v188_v57 = vmul.f32 %v2054_v59, %v187_v11 }
 0x57c   :  { %v189_v51 = vmul.f32 0.5, %v188_v57 }
 0x57e   :  { %v190_v56 = vsub.f32 1.5, %v189_v51 }
 0x580   :  { %v191_v35 = vmul.f32 %v2054_v59, %v190_v56 }
 0x582   :  { %v195_v63 = vsel %vm194_vm2, %v2054_v59, %v191_v35 }
 0x583   :  { %v200_v33 = vmul.f32 %v195_v63, %v2881_v27  ;;  %v201_v4 = vmul.f32 %v195_v63, %v2884_v16 }
 0x584   :  { %v937_v39 = vpop.permute.xlu1 %936 }
 0x591   :  { %945 = vperm.xlu2 %2043, %v1974_v10  }
 0x5ec   :  { %v899_v58 = vpop.xlane.xlu2 %898 }
 0x5ed   :  { %v900_v22 = vmul.f32 %v899_v58, %v2252_v41 }
 0x5ef   :  { %v901_v20 = vsub.f32 %v844_v2, %v900_v22  ;;  %v2920_v6 = vsub.f32 %v857_v61, %v900_v22  ;;  %v903_v49 = vsub.f32 %v870_v26, %v900_v22  ;;  %v904_v21 = vsub.f32 %v883_v5, %v900_v22  ;;  %v212_v61 = vpop.permute.xlu0 %211 }
 0x5f0   :  { %v202_v5 = vmul.f32 %v195_v63, %v2887_v31  ;;  %v203_v2 = vmul.f32 %v195_v63, %v2890_v54  ;;  %v219_v44 = vmul.f32 %v212_v61, %v201_v4 }
 0x5f1   :  { %v905_v42 = vmul.f32 %v901_v20, %v901_v20  ;;  %v906_v28 = vmul.f32 %v2920_v6, %v2920_v6  ;;  %v907_v62 = vmul.f32 %v903_v49, %v903_v49  ;;  %v908_v52 = vmul.f32 %v904_v21, %v904_v21 }
 0x5f2   :  { %v220_v30 = vmul.f32 %v212_v61, %v202_v5  ;;  %v221_v24 = vmul.f32 %v212_v61, %v203_v2  ;;  %v2995_v59 = vadd.f32 %v2917_v12, %v219_v44 }
 0x5f3   :  { %v909_v25 = vsel %vm402_vm9, %v905_v42, 0.0  ;;  %v910_v48 = vsel %vm402_vm9, %v906_v28, 0.0  ;;  %v912_v55 = vsel %vm402_vm9, %v907_v62, 0.0  ;;  %v914_v50 = vsel %vm402_vm9, %v908_v52, 0.0 }
 0x5f4   :  { %v911_v29 = vadd.f32 %v910_v48, %v909_v25  ;;  %v2929_v60 = vpop.permute.xlu2 %945  ;;  %v2936_v10 = vadd.f32 %v2917_v12, %v220_v30  ;;  %v2939_v31 = vadd.f32 %v2917_v12, %v221_v24  ;;  %v245_v11 = vmax.f32 %v2995_v59, 0.0 }
 0x5f6   :  { %v913_v47 = vadd.f32 %v912_v55, %v911_v29  ;;  %v247_v27 = vmax.f32 %v2939_v31, 0.0 }
 0x5f8   :  { %v915_v13 = vadd.f32 %v914_v50, %v913_v47 }
 0x5fa   :  { %916 = vadd.xlane.f32.xlu2 %v915_v13 }
 0x66d   :  { %v917_v0 = vpop.xlane.xlu2 %916 }
 0x66e   :  { %v918_v1 = vmul.f32 %v917_v0, %v2252_v41  ;;  %v1981_v0 = vld [vmem:[%s3586_s5 + $0x100] sm:$0xff] }
 0x670   :  { %v919_v14 = vadd.f32 1e-05, %v918_v1 }
 0x672   :  { %2055 = vrsqrt.f32 %v919_v14  ;;  %vm926_vm0 = vweird.f32 %v919_v14 }
 0x678   :  { %v2056_v38 = vpop.eup %2055 }
 0x679   :  { %v921_v15 = vmul.f32 %v2056_v38, %v919_v14  ;;  %vm927_vm3 = vweird.f32 %v2056_v38 }
 0x67a   :  { %vm928_vm15 = vmor %vm926_vm0, %vm927_vm3  ;;  %vm3592_vm0 = vcmask 293888  }
 0x67b   :  { %v922_v26 = vmul.f32 %v2056_v38, %v921_v15  ;;  %v2085_v15 = vld [vmem:[%s3582_s1 + $0x90] sm:$0xf] }
 0x67d   :  { %v923_v17 = vmul.f32 0.5, %v922_v26 }
 0x67f   :  { %v924_v3 = vsub.f32 1.5, %v923_v17 }
 0x681   :  { %v925_v34 = vmul.f32 %v2056_v38, %v924_v3 }
 0x683   :  { %v929_v32 = vsel %vm928_vm15, %v2056_v38, %v925_v34  ;;  %v2086_v34 = vld [vmem:[%s3582_s1 + $0x98] sm:$0xf] }
 0x684   :  { %v930_v8 = vmul.f32 %v929_v32, %v901_v20  ;;  %v932_v45 = vmul.f32 %v929_v32, %v903_v49  ;;  %v933_v46 = vmul.f32 %v929_v32, %v904_v21  ;;  %v218_v20 = vmul.f32 %v212_v61, %v200_v33 }
 0x685   :  { %v246_v49 = vmax.f32 %v2936_v10, 0.0  ;;  %v931_v50 = vmul.f32 %v929_v32, %v2920_v6  ;;  %v2023_v10 = vld [vmem:[%s3585_s4 + $0x8] sm:$0xff] }
 0x686   :  { %v941_v54 = vmul.f32 %v937_v39, %v932_v45  ;;  %v942_v58 = vmul.f32 %v937_v39, %v933_v46  ;;  %v939_v22 = vmul.f32 %v937_v39, %v930_v8  ;;  %v2967_v29 = vadd.f32 %v2917_v12, %v218_v20  ;;  %v1980_v12 = vld [vmem:[%s3586_s5 + $0x60] sm:$0xff] }
 0x687   :  { %v940_v40 = vmul.f32 %v937_v39, %v931_v50 }
 0x688   :  { %v2942_v42 = vadd.f32 %v2929_v60, %v941_v54  ;;  %v2945_v28 = vadd.f32 %v2929_v60, %v942_v58  ;;  %v2952_v52 = vadd.f32 %v2929_v60, %v939_v22  ;;  %v244_v47 = vmax.f32 %v2967_v29, 0.0 }
 0x689   :  { %v2992_v6 = vadd.f32 %v2929_v60, %v940_v40 }
 0x68a   :  { %v954_v21 = vmax.f32 %v2942_v42, 0.0  ;;  %v955_v62 = vmax.f32 %v2945_v28, 0.0  ;;  %v952_v55 = vmax.f32 %v2952_v52, 0.0 }
 0x68b   :  { %v953_v16 = vmax.f32 %v2992_v6, 0.0 }
 0x68c   :  { %v2958_v25 = vadd.f32 %v954_v21, %v246_v49  ;;  %v2964_v48 = vadd.f32 %v955_v62, %v247_v27  ;;  %v2982_v13 = vadd.f32 %v952_v55, %v244_v47 }
 0x68d   :  { %v3009_v60 = vadd.f32 %v953_v16, %v245_v11 }
 0x68e   :  { %1014 = vrot.lane.b32.xlu0 %v2964_v48, %s2133_s20  ;;  %1050 = vrot.lane.b32.xlu2 %v2964_v48, %s2134_s21 }
 0x68f   :  { %1048 = vrot.lane.b32.xlu1 %v2958_v25, %s2134_s21 }
 0x696   :  { %1036 = vrot.lane.b32.xlu2 %v2958_v25, %s2135_s22  ;;  %1044 = vrot.lane.b32.xlu0 %v2982_v13, %s2134_s21 }
 0x697   :  { %1012 = vrot.lane.b32.xlu1 %v2958_v25, %s2133_s20 }
 0x69e   :  { %1008 = vrot.lane.b32.xlu2 %v2982_v13, %s2133_s20  ;;  %1026 = vrot.lane.b32.xlu0 %v2964_v48, %s2137_s24 }
 0x69f   :  { %1038 = vrot.lane.b32.xlu1 %v2964_v48, %s2135_s22 }
 0x6a6   :  { %1032 = vrot.lane.b32.xlu2 %v2982_v13, %s2135_s22  ;;  %974 = vrot.lane.b32.xlu0 %v3009_v60, %s2136_s23 }
 0x6a7   :  { %1024 = vrot.lane.b32.xlu1 %v2958_v25, %s2137_s24 }
 0x6ae   :  { %976 = vrot.lane.b32.xlu2 %v2958_v25, %s2136_s23  ;;  %1000 = vrot.lane.b32.xlu0 %v2958_v25, %s2140_s27 }
 0x6af   :  { %1046 = vrot.lane.b32.xlu1 %v3009_v60, %s2134_s21 }
 0x6b6   :  { %1010 = vrot.lane.b32.xlu2 %v3009_v60, %s2133_s20  ;;  %1034 = vrot.lane.b32.xlu0 %v3009_v60, %s2135_s22  ;;  %s1940_s22 = sshll.u32 %s3589_s8, 4  ;;  %s1941_s22 = int_to_ptr.hbm [resolvable:$true] %s1940_s22 }
 0x6b7   :  { %998 = vrot.lane.b32.xlu1 %v3009_v60, %s2140_s27 }
 0x6be   :  { %962 = vrot.lane.b32.xlu2 %v3009_v60, %s2138_s25  ;;  %978 = vrot.lane.b32.xlu0 %v2964_v48, %s2136_s23 }
 0x6bf   :  { %1020 = vrot.lane.b32.xlu1 %v2982_v13, %s2137_s24 }
 0x6c6   :  { %986 = vrot.lane.b32.xlu2 %v3009_v60, %s2139_s26  ;;  %1002 = vrot.lane.b32.xlu0 %v2964_v48, %s2140_s27 }
 0x6c7   :  { %964 = vrot.lane.b32.xlu1 %v2958_v25, %s2138_s25 }
 0x6ce   :  { %1022 = vrot.lane.b32.xlu2 %v3009_v60, %s2137_s24  ;;  %972 = vrot.lane.b32.xlu0 %v2982_v13, %s2136_s23  ;;  %s2145_s23 = smov 32  }
 0x6cf   :  { %988 = vrot.lane.b32.xlu1 %v2958_v25, %s2139_s26 }
 0x6d6   :  { %990 = vrot.lane.b32.xlu2 %v2964_v48, %s2139_s26  ;;  %960 = vrot.lane.b32.xlu0 %v2982_v13, %s2138_s25 }
 0x6d7   :  { %966 = vrot.lane.b32.xlu1 %v2964_v48, %s2138_s25 }
 0x6de   :  { %984 = vrot.lane.b32.xlu2 %v2982_v13, %s2139_s26 }
 0x6df   :  { %996 = vrot.lane.b32.xlu1 %v2982_v13, %s2140_s27 }
 0x6e6   :  { %1270 = vperm.xlu2 %2043, %v1980_v12   ;;  %v2087_v12 = vld [vmem:[%s3582_s1 + $0x70] sm:$0xff] }
 0x6e8   :  { %v1051_v57 = vpop.permute.xlu2 %1050 }
 0x6ee   :  { %1279 = vperm.xlu2 %2043, %v1981_v0   ;;  %v2088_v0 = vld [vmem:[%s3582_s1 + $0x50] sm:$0xff] }
 0x6f0   :  { %v1037_v1 = vpop.permute.xlu2 %1036 }
 0x6f8   :  { %v1009_v51 = vpop.permute.xlu2 %1008 }
 0x700   :  { %v1015_v14 = vpop.permute.xlu0 %1014  ;;  %v3063_v56 = vpop.permute.xlu2 %1032 }
 0x701   :  { %v1049_v35 = vpop.permute.xlu1 %1048 }
 0x702   :  { %v1052_v38 = vsel %vm349_vm5, %v1049_v35, %v1051_v57 }
 0x703   :  { %v1138_v63 = vmul.f32 %v2085_v15, %v1052_v38 }
 0x705   :  { %v1152_v26 = vpack.c.bf16 %v1138_v63, %v1138_v63 }
 0x707   :  { %v1164_v17 = vsel %vm476_vm6, %v1152_v26, 0 }
 0x708   :  { %1200 = vmatpush.bf16.msra.mxu2 %v1164_v17  ;;  %v3071_v5 = vpop.permute.xlu2 %976  ;;  %v1045_v2 = vpop.permute.xlu0 %1044 }
 0x709   :  { %v1013_v61 = vpop.permute.xlu1 %1012  ;;  %v1055_v3 = vsel %vm349_vm5, %v1051_v57, %v1045_v2 }
 0x70a   :  { %v1139_v30 = vmul.f32 %v2086_v34, %v1055_v3  ;;  %v1016_v39 = vsel %vm310_vm7, %v1013_v61, %v1015_v14 }
 0x70b   :  { %v1086_v33 = vrot.slane %v1016_v39, 4 }
 0x70c   :  { %v1153_v24 = vpack.c.bf16 %v1139_v30, %v1139_v30  ;;  %v2089_v30 = vld [vmem:[%s3582_s1 + $0x80] sm:$0xf] }
 0x70d   :  { %v1114_v20 = vsel %vm402_vm9, %v2958_v25, %v1086_v33 }
 0x70e   :  { %v1167_v32 = vsel %vm476_vm6, %v1153_v24, 0  ;;  %v1130_v38 = vmul.f32 %v2088_v0, %v1114_v20 }
 0x70f   :  { %1213 = vmatpush.bf16.msrb.mxu3 %v1167_v32  ;;  %v2090_v32 = vld [vmem:[%s3582_s1 + $0x88] sm:$0xf] }
 0x710   :  { %v1011_v8 = vpop.permute.xlu2 %1010  ;;  %v3079_v45 = vpop.permute.xlu0 %1026 }
 0x711   :  { %v1039_v46 = vpop.permute.xlu1 %1038  ;;  %v1017_v34 = vsel %vm310_vm7, %v1011_v8, %v1013_v61 }
 0x712   :  { %v1040_v54 = vsel %vm336_vm8, %v1037_v1, %v1039_v46  ;;  %v1085_v20 = vrot.slane %v1017_v34, 4 }
 0x713   :  { %v1098_v50 = vrot.slane %v1040_v54, 4 }
 0x714   :  { %v1113_v0 = vsel %vm402_vm9, %v3009_v60, %v1085_v20  ;;  %v1043_v60 = vsel %vm336_vm8, %v1039_v46, %v3063_v56 }
 0x718   :  { %v3085_v58 = vpop.permute.xlu2 %962  ;;  %v3087_v22 = vpop.permute.xlu0 %974 }
 0x719   :  { %v1025_v4 = vpop.permute.xlu1 %1024 }
 0x71a   :  { %v1028_v40 = vsel %vm323_vm10, %v1025_v4, %v3079_v45 }
 0x71b   :  { %v1118_v44 = vsel %vm402_vm9, %v1028_v40, %v1098_v50 }
 0x71c   :  { %v1134_v57 = vmul.f32 %v2087_v12, %v1118_v44  ;;  %v1019_v12 = vsel %vm310_vm7, %v1015_v14, %v1009_v51 }
 0x71e   :  { %v1148_v15 = vpack.c.bf16 %v1134_v57, %v1130_v38  ;;  %v1018_v57 = vsel %vm310_vm7, %v1009_v51, %v1011_v8  ;;  %v2092_v51 = vld [vmem:[%s3582_s1 + $0x68] sm:$0xff]  ;;  %vm3595_vm7 = vmmov %vm3592_vm0 }
 0x720   :  { %1201 = vmatpush.bf16.msra.mxu2 %v1148_v15  ;;  %v3101_v25 = vpop.permute.xlu2 %986  ;;  %v3103_v63 = vpop.permute.xlu0 %1000 }
 0x721   :  { %v1047_v26 = vpop.permute.xlu1 %1046 }
 0x722   :  { %v1053_v17 = vsel %vm349_vm5, %v1047_v26, %v1049_v35  ;;  %v1054_v3 = vsel %vm349_vm5, %v1045_v2, %v1047_v26  ;;  %vm3593_vm5 = vmmov %vm3592_vm0 }
 0x723   :  { %v1136_v24 = vmul.f32 %v2089_v30, %v1054_v3  ;;  %v1137_v39 = vmul.f32 %v2090_v32, %v1053_v17  ;;  %v1087_v17 = vrot.slane %v1019_v12, 4  ;;  %v1084_v3 = vrot.slane %v1018_v57, 4 }
 0x724   :  { %v1099_v32 = vrot.slane %v1043_v60, 4 }
 0x725   :  { %v1150_v33 = vpack.c.bf16 %v1136_v24, %v1136_v24  ;;  %v1151_v54 = vpack.c.bf16 %v1137_v39, %v1137_v39  ;;  %v1115_v24 = vsel %vm402_vm9, %v2964_v48, %v1087_v17  ;;  %v1112_v39 = vsel %vm402_vm9, %v2982_v13, %v1084_v3  ;;  %v2093_v48 = vld [vmem:[%s3582_s1 + $0x60] sm:$0xff]  ;;  %v2094_v13 = vld [vmem:[%s3582_s1 + $0x78] sm:$0xff] }
 0x727   :  { %v1158_v35 = vsel %vm476_vm6, %v1150_v33, 0  ;;  %v1161_v2 = vsel %vm476_vm6, %v1151_v54, 0  ;;  %vm3594_vm6 = vmmov %vm3592_vm0 }
 0x728   :  { %1174 = vmatpush.bf16.msrb.mxu0 %v1158_v35  ;;  %1187 = vmatpush.bf16.msra.mxu1 %v1161_v2  ;;  %v1023_v61 = vpop.permute.xlu2 %1022  ;;  %v1035_v50 = vpop.permute.xlu0 %1034 }
 0x729   :  { %v3119_v40 = vpop.permute.xlu1 %998  ;;  %v1041_v44 = vsel %vm336_vm8, %v1035_v50, %v1037_v1  ;;  %v1029_v15 = vsel %vm323_vm10, %v1023_v61, %v1025_v4  ;;  %v2091_v1 = vld [vmem:[%s3582_s1 + $0x48] sm:$0xff]  ;;  %v1042_v8 = vsel %vm336_vm8, %v3063_v56, %v1035_v50 }
 0x72a   :  { %v1097_v38 = vrot.slane %v1041_v44, 4  ;;  %v1129_v34 = vmul.f32 %v2091_v1, %v1113_v0  ;;  %v1096_v33 = vrot.slane %v1042_v8, 4  ;;  %v1005_v17 = vsel %vm297_vm11, %v3119_v40, %v3103_v63 }
 0x72c   :  { %v1117_v26 = vsel %vm402_vm9, %v1029_v15, %v1097_v38 }
 0x72d   :  { %v1133_v14 = vmul.f32 %v2092_v51, %v1117_v26  ;;  %v981_v26 = vsel %vm271_vm12, %v3087_v22, %v3071_v5 }
 0x72e   :  { %v1062_v1 = vrot.slane %v981_v26, 4 }
 0x72f   :  { %v1147_v4 = vpack.c.bf16 %v1133_v14, %v1129_v34  ;;  %v1074_v34 = vrot.slane %v1005_v17, 4 }
 0x730   :  { %v979_v30 = vpop.permute.xlu0 %978 }
 0x731   :  { %v1021_v54 = vpop.permute.xlu1 %1020  ;;  %1188 = vmatpush.bf16.msra.mxu1 %v1147_v4 }
 0x732   :  { %v1030_v20 = vsel %vm323_vm10, %v1021_v54, %v1023_v61  ;;  %v1031_v46 = vsel %vm323_vm10, %v3079_v45, %v1021_v54  ;;  %v2095_v61 = vld [vmem:[%s3582_s1 + $0x40] sm:$0xff]  ;;  %v2096_v45 = vld [vmem:[%s3582_s1 + $0x58] sm:$0xff] }
 0x733   :  { %v1116_v56 = vsel %vm402_vm9, %v1030_v20, %v1096_v33  ;;  %v1119_v35 = vsel %vm402_vm9, %v1031_v46, %v1099_v32  ;;  %v1128_v44 = vmul.f32 %v2095_v61, %v1112_v39  ;;  %v1131_v12 = vmul.f32 %v2096_v45, %v1115_v24  ;;  %v2097_v24 = vld [vmem:[%s3582_s1 + $0x10] sm:$0xff]  ;;  %v991_v20 = vpop.permute.xlu2 %990 }
 0x734   :  { %v1132_v2 = vmul.f32 %v2093_v48, %v1116_v56  ;;  %v1135_v50 = vmul.f32 %v2094_v13, %v1119_v35  ;;  %v2098_v33 = vld [vmem:[%s3582_s1 + $0x30] sm:$0xff]  ;;  %v980_v46 = vsel %vm271_vm12, %v3071_v5, %v979_v30  ;;  %v2099_v5 = vld [vmem:[%s3582_s1 + $0x38] sm:$0xff] }
 0x736   :  { %v1146_v57 = vpack.c.bf16 %v1132_v2, %v1128_v44  ;;  %v1149_v0 = vpack.c.bf16 %v1135_v50, %v1131_v12  ;;  %v1063_v2 = vrot.slane %v980_v46, 4  ;;  %v2100_v12 = vld [vmem:[%s3582_s1 + $0x18] sm:$0xff]  ;;  %v2102_v46 = vld [vmem:[%s3582_s1 + $0x8] sm:$0xff] }
 0x738   :  { %1175 = vmatpush.bf16.msrb.mxu0 %v1146_v57  ;;  %1214 = vmatpush.bf16.msrb.mxu3 %v1149_v0  ;;  %v1003_v15 = vpop.permute.xlu0 %1002 }
 0x739   :  { %v965_v38 = vpop.permute.xlu1 %964  ;;  %v1004_v39 = vsel %vm297_vm11, %v3103_v63, %v1003_v15  ;;  %v1975_v63 = vld [vmem:[%s3584_s3 + $0x4] sm:$0x3] }
 0x73a   :  { %v969_v3 = vsel %vm258_vm14, %v3085_v58, %v965_v38  ;;  %v1075_v48 = vrot.slane %v1004_v39, 4 }
 0x73b   :  { %v1106_v51 = vsel %vm402_vm9, %v969_v3, %v1062_v1 }
 0x73c   :  { %v1122_v32 = vmul.f32 %v2097_v24, %v1106_v51 }
 0x740   :  { %v973_v4 = vpop.permute.xlu0 %972 }
 0x741   :  { %v989_v14 = vpop.permute.xlu1 %988  ;;  %v982_v26 = vsel %vm271_vm12, %v973_v4, %v3087_v22 }
 0x742   :  { %v993_v60 = vsel %vm284_vm13, %v3101_v25, %v989_v14  ;;  %v992_v56 = vsel %vm284_vm13, %v989_v14, %v991_v20  ;;  %v1061_v14 = vrot.slane %v982_v26, 4 }
 0x743   :  { %v1110_v8 = vsel %vm402_vm9, %v993_v60, %v1074_v34  ;;  %v1111_v13 = vsel %vm402_vm9, %v992_v56, %v1075_v48  ;;  %v985_v34 = vpop.permute.xlu2 %984 }
 0x744   :  { %v1126_v54 = vmul.f32 %v2098_v33, %v1110_v8  ;;  %v1127_v45 = vmul.f32 %v2099_v5, %v1111_v13  ;;  %v995_v39 = vsel %vm284_vm13, %v991_v20, %v985_v34  ;;  %v2104_v20 = vld [vmem:[%s3582_s1 + $0x28] sm:$0xff] }
 0x746   :  { %v1144_v35 = vpack.c.bf16 %v1126_v54, %v1122_v32  ;;  %v994_v32 = vsel %vm284_vm13, %v985_v34, %v3101_v25  ;;  %v2103_v25 = vld [vmem:[%s3582_s1 + $0x20] sm:$0xff]  ;;  %v2000_v34 = vld [vmem:[%s3586_s5 + $0x90] sm:$0xff] }
 0x748   :  { %1202 = vmatpush.bf16.msra.mxu2 %v1144_v35  ;;  %v961_v0 = vpop.permute.xlu0 %960 }
 0x749   :  { %v967_v50 = vpop.permute.xlu1 %966  ;;  %v970_v3 = vsel %vm258_vm14, %v961_v0, %v3085_v58 }
 0x74a   :  { %v968_v61 = vsel %vm258_vm14, %v965_v38, %v967_v50  ;;  %v983_v38 = vsel %vm271_vm12, %v979_v30, %v973_v4  ;;  %v971_v1 = vsel %vm258_vm14, %v967_v50, %v961_v0  ;;  %v1105_v4 = vsel %vm402_vm9, %v970_v3, %v1061_v14 }
 0x74b   :  { %v1107_v44 = vsel %vm402_vm9, %v968_v61, %v1063_v2  ;;  %1978 = vmatmul.msk.bf16.vlgmr.msra.gmra.mxu2 %vm3592_vm0, %v1975_v63  ;;  %v1060_v51 = vrot.slane %v983_v38, 4  ;;  %v1121_v56 = vmul.f32 %v2102_v46, %v1105_v4  ;;  %vm1328_vm12 = vcmask 130048  }
 0x74c   :  { %v1123_v57 = vmul.f32 %v2100_v12, %v1107_v44 }
 0x74d   :  { %v1104_v8 = vsel %vm402_vm9, %v971_v1, %v1060_v51 }
 0x74e   :  { %v1145_v17 = vpack.c.bf16 %v1127_v45, %v1123_v57 }
 0x750   :  { %1215 = vmatpush.bf16.msrb.mxu3 %v1145_v17 }
 0x751   :  { %v997_v60 = vpop.permute.xlu1 %996 }
 0x752   :  { %v1006_v22 = vsel %vm297_vm11, %v997_v60, %v3119_v40  ;;  %v1007_v30 = vsel %vm297_vm11, %v1003_v15, %v997_v60  ;;  %v2101_v15 = vld [vmem:[%s3582_s1] sm:$0xff]  ;;  %s2143_s1 = smov [#allocation2]  }
 0x753   :  { %v1072_v58 = vrot.slane %v1007_v30, 4  ;;  %v1073_v24 = vrot.slane %v1006_v22, 4  ;;  %1979 = vmatmul.msk.bf16.vlgmr.msrb.gmra.mxu3 %vm3593_vm5, %v1975_v63  ;;  %v1120_v54 = vmul.f32 %v2101_v15, %v1104_v8  ;;  %s1938_s16 = sshll.u32 %s2143_s1, 4  ;;  %s1939_s16 = int_to_ptr.vmem [resolvable:$true] %s1938_s16 }
 0x755   :  { %v1108_v40 = vsel %vm402_vm9, %v995_v39, %v1072_v58  ;;  %v1109_v33 = vsel %vm402_vm9, %v994_v32, %v1073_v24 }
 0x756   :  { %v1124_v23 = vmul.f32 %v2103_v25, %v1108_v40  ;;  %v1125_v35 = vmul.f32 %v2104_v20, %v1109_v33  ;;  %v2001_v25 = vld [vmem:[%s3586_s5 + $0x98] sm:$0xff] }
 0x758   :  { %v1142_v48 = vpack.c.bf16 %v1124_v23, %v1120_v54  ;;  %v1143_v2 = vpack.c.bf16 %v1125_v35, %v1121_v56 }
 0x75a   :  { %1176 = vmatpush.bf16.msrb.mxu0 %v1142_v48  ;;  %1189 = vmatpush.bf16.msra.mxu1 %v1143_v2 }
 0x75d   :  { %1976 = vmatmul.msk.bf16.vlgmr.msrb.gmra.mxu0 %vm3594_vm6, %v1975_v63  ;;  %1977 = vmatmul.msk.bf16.vlgmr.msra.gmra.mxu1 %vm3595_vm7, %v1975_v63 }
 0x7ce   :  { %v1204_v13 = vpop.f32.mrf.mxu2 }
 0x7cf   :  { %v1228_v45 = vsel %vm402_vm9, %v1204_v13, 0.0 }
 0x7d6   :  { %v1217_v50 = vpop.f32.mrf.mxu3  ;;  %v1206_v61 = vpop.f32.mrf.mxu2 }
 0x7d7   :  { %v1230_v26 = vsel %vm402_vm9, %v1217_v50, 0.0 }
 0x7da   :  { %v1178_v44 = vpop.f32.mrf.mxu0  ;;  %v1191_v5 = vpop.f32.mrf.mxu1 }
 0x7db   :  { %v1225_v12 = vsel %vm402_vm9, %v1178_v44, 0.0  ;;  %v1226_v57 = vsel %vm402_vm9, %v1191_v5, 0.0 }
 0x7dc   :  { %v1227_v0 = vadd.f32 %v1226_v57, %v1225_v12 }
 0x7de   :  { %v1219_v38 = vpop.f32.mrf.mxu3  ;;  %v1229_v17 = vadd.f32 %v1228_v45, %v1227_v0 }
 0x7e0   :  { %v1231_v3 = vadd.f32 %v1230_v26, %v1229_v17 }
 0x7e2   :  { %v1180_v1 = vpop.f32.mrf.mxu0  ;;  %1232 = vadd.xlane.f32.xlu1 %v1231_v3  ;;  %v1193_v63 = vpop.f32.mrf.mxu1 }
 0x7fb   :  { %1573 = vperm.xlu1 %2041, %v2000_v34   ;;  %v1294_v34 = vrot.slane %v952_v55, 4 }
 0x7fd   :  { %v1302_v52 = vsel %vm402_vm9, %v606_v9, %v1294_v34  ;;  %v2022_v9 = vld [vmem:[%s3585_s4] sm:$0xff] }
 0x855   :  { %v1233_v51 = vpop.xlane.xlu1 %1232 }
 0x856   :  { %v1234_v14 = vmul.f32 %v1233_v51, %v2252_v41  ;;  %v1295_v51 = vrot.slane %v953_v16, 4 }
 0x858   :  { %v1235_v60 = vsub.f32 %v1178_v44, %v1234_v14  ;;  %v1236_v22 = vsub.f32 %v1191_v5, %v1234_v14  ;;  %v1237_v30 = vsub.f32 %v1204_v13, %v1234_v14  ;;  %v1238_v8 = vsub.f32 %v1217_v50, %v1234_v14  ;;  %v1271_v50 = vpop.permute.xlu2 %1270 }
 0x859   :  { %v1296_v14 = vrot.slane %v954_v21, 4  ;;  %v1303_v42 = vsel %vm402_vm9, %v607_v37, %v1295_v51 }
 0x85a   :  { %v1239_v4 = vmul.f32 %v1235_v60, %v1235_v60  ;;  %v1240_v58 = vmul.f32 %v1236_v22, %v1236_v22  ;;  %v1241_v24 = vmul.f32 %v1237_v30, %v1237_v30  ;;  %v1242_v32 = vmul.f32 %v1238_v8, %v1238_v8 }
 0x85b   :  { %v1304_v28 = vsel %vm402_vm9, %v608_v43, %v1296_v14 }
 0x85c   :  { %v1243_v39 = vsel %vm402_vm9, %v1239_v4, 0.0  ;;  %v1244_v40 = vsel %vm402_vm9, %v1240_v58, 0.0  ;;  %v1246_v15 = vsel %vm402_vm9, %v1241_v24, 0.0  ;;  %v1248_v46 = vsel %vm402_vm9, %v1242_v32, 0.0 }
 0x85d   :  { %v1245_v33 = vadd.f32 %v1244_v40, %v1243_v39 }
 0x85f   :  { %v1247_v54 = vadd.f32 %v1246_v15, %v1245_v33 }
 0x860   :  { %v1280_v63 = vpop.permute.xlu2 %1279 }
 0x861   :  { %v1249_v56 = vadd.f32 %v1248_v46, %v1247_v54 }
 0x863   :  { %1250 = vadd.xlane.f32.xlu0 %v1249_v56 }
 0x877   :  { %1578 = vperm.xlu0 %2042, %v2001_v25  }
 0x8d6   :  { %v1251_v23 = vpop.xlane.xlu0 %1250 }
 0x8d7   :  { %v1252_v20 = vmul.f32 %v1251_v23, %v2252_v41 }
 0x8d9   :  { %v1253_v35 = vadd.f32 1e-05, %v1252_v20 }
 0x8db   :  { %2057 = vrsqrt.f32 %v1253_v35  ;;  %vm1260_vm10 = vweird.f32 %v1253_v35 }
 0x8e1   :  { %v2058_v48 = vpop.eup %2057 }
 0x8e2   :  { %v1255_v2 = vmul.f32 %v2058_v48, %v1253_v35  ;;  %vm1261_vm8 = vweird.f32 %v2058_v48 }
 0x8e3   :  { %vm1262_vm11 = vmor %vm1260_vm10, %vm1261_vm8  ;;  %vm1672_vm10 = vcmask 7168  }
 0x8e4   :  { %v1256_v13 = vmul.f32 %v2058_v48, %v1255_v2 }
 0x8e6   :  { %v1257_v61 = vmul.f32 0.5, %v1256_v13 }
 0x8e8   :  { %v1258_v44 = vsub.f32 1.5, %v1257_v61 }
 0x8ea   :  { %v1259_v5 = vmul.f32 %v2058_v48, %v1258_v44 }
 0x8ec   :  { %v1263_v45 = vsel %vm1262_vm11, %v2058_v48, %v1259_v5  ;;  %vm3596_vm11 = vcmask 261120  }
 0x8ed   :  { %v1264_v12 = vmul.f32 %v1263_v45, %v1235_v60  ;;  %v1265_v57 = vmul.f32 %v1263_v45, %v1236_v22  ;;  %v1266_v0 = vmul.f32 %v1263_v45, %v1237_v30  ;;  %v1267_v26 = vmul.f32 %v1263_v45, %v1238_v8 }
 0x8ee   :  { %v1297_v60 = vrot.slane %v955_v62, 4 }
 0x8ef   :  { %v1273_v38 = vmul.f32 %v1271_v50, %v1264_v12  ;;  %v1274_v17 = vmul.f32 %v1271_v50, %v1265_v57  ;;  %v1275_v3 = vmul.f32 %v1271_v50, %v1266_v0  ;;  %v1276_v1 = vmul.f32 %v1271_v50, %v1267_v26  ;;  %v2005_v50 = vld [vmem:[%s3586_s5 + $0x138] sm:$0xff]  ;;  %v2004_v57 = vld [vmem:[%s3586_s5 + $0x130] sm:$0xff]  ;;  %v1998_v0 = vld [vmem:[%s3586_s5 + $0x80] sm:$0xff]  ;;  %v3313_v26 = vpop.permute.xlu0 %1578 }
 0x8f0   :  { %v1305_v21 = vsel %vm402_vm9, %v609_v19, %v1297_v60 }
 0x8f1   :  { %v1282_v22 = vadd.f32 %v1280_v63, %v1273_v38  ;;  %v1283_v30 = vadd.f32 %v1280_v63, %v1274_v17  ;;  %v1284_v8 = vadd.f32 %v1280_v63, %v1275_v3  ;;  %v1285_v4 = vadd.f32 %v1280_v63, %v1276_v1  ;;  %v3315_v38 = vpop.permute.xlu1 %1573 }
 0x8f3   :  { %v1286_v58 = vmax.f32 %v1282_v22, 0.0  ;;  %v1287_v24 = vmax.f32 %v1283_v30, 0.0  ;;  %v1288_v32 = vmax.f32 %v1284_v8, 0.0  ;;  %v1289_v39 = vmax.f32 %v1285_v4, 0.0 }
 0x8f5   :  { %v1306_v62 = vsel %vm402_vm9, %v1286_v58, %v244_v47  ;;  %v1307_v36 = vsel %vm402_vm9, %v1287_v24, %v245_v11  ;;  %v1308_v18 = vsel %vm402_vm9, %v1288_v32, %v246_v49  ;;  %v1309_v7 = vsel %vm402_vm9, %v1289_v39, %v247_v27 }
 0x8f6   :  { %v1310_v43 = vpack.c.bf16 %v1306_v62, %v1302_v52  ;;  %v1311_v53 = vpack.c.bf16 %v1307_v36, %v1303_v42  ;;  %v1312_v37 = vpack.c.bf16 %v1308_v18, %v1304_v28  ;;  %v1313_v19 = vpack.c.bf16 %v1309_v7, %v1305_v21 }
 0x8f8   :  { %1342 = vmatpush.bf16.msra.mxu0 %v1310_v43  ;;  %1361 = vmatpush.bf16.msrb.mxu1 %v1311_v53 }
 0x8f9   :  { %1380 = vmatpush.bf16.msrb.mxu2 %v1312_v37  ;;  %1399 = vmatpush.bf16.msra.mxu3 %v1313_v19 }
 0x8fb   :  { %1990 = vmatmul.msk.bf16.vlgmr.msra.gmra.mxu0 %vm1328_vm12, %v2022_v9  ;;  %1992 = vmatmul.msk.bf16.vlgmr.msrb.gmra.mxu1 %vm1328_vm12, %v2022_v9 }
 0x8fc   :  { %1994 = vmatmul.msk.bf16.vlgmr.msrb.gmra.mxu2 %vm1328_vm12, %v2022_v9  ;;  %1996 = vmatmul.msk.bf16.vlgmr.msra.gmra.mxu3 %vm1328_vm12, %v2022_v9 }
 0x90b   :  { %1991 = vmatmul.msk.bf16.gmra.mxu0 %vm1328_vm12, %v2023_v10  ;;  %1993 = vmatmul.msk.bf16.gmra.mxu1 %vm1328_vm12, %v2023_v10 }
 0x90c   :  { %1995 = vmatmul.msk.bf16.gmra.mxu2 %vm1328_vm12, %v2023_v10  ;;  %1997 = vmatmul.msk.bf16.gmra.mxu3 %vm1328_vm12, %v2023_v10  ;;  %vm1719_vm12 = vcmask 1040384  }
 0x978   :  { %v1344_v31 = vpop.f32.mrf.mxu0  ;;  %v1363_v49 = vpop.f32.mrf.mxu1 }
 0x979   :  { %v1421_v27 = vadd.f32 %v1363_v49, %v1344_v31 }
 0x97f   :  { %v1382_v29 = vpop.f32.mrf.mxu2  ;;  %v1401_v55 = vpop.f32.mrf.mxu3 }
 0x980   :  { %v1422_v47 = vadd.f32 %v1421_v27, %v1382_v29  ;;  %v1346_v6 = vpop.f32.mrf.mxu0  ;;  %v1365_v59 = vpop.f32.mrf.mxu1 }
 0x981   :  { %v1426_v11 = vadd.f32 %v1365_v59, %v1346_v6 }
 0x982   :  { %v1423_v16 = vadd.f32 %v1422_v47, %v1401_v55 }
 0x984   :  { %1424 = vadd.xlane.f32.xlu0 %v1423_v16 }
 0x987   :  { %v1384_v40 = vpop.f32.mrf.mxu2  ;;  %v1403_v33 = vpop.f32.mrf.mxu3 }
 0x988   :  { %v1427_v15 = vadd.f32 %v1426_v11, %v1384_v40  ;;  %v1349_v54 = vpop.f32.mrf.mxu0  ;;  %v1368_v46 = vpop.f32.mrf.mxu1 }
 0x989   :  { %v1431_v25 = vadd.f32 %v1368_v46, %v1349_v54 }
 0x98a   :  { %v1428_v56 = vadd.f32 %v1427_v15, %v1403_v33 }
 0x98c   :  { %1429 = vadd.xlane.f32.xlu1 %v1428_v56 }
 0x98f   :  { %v1387_v23 = vpop.f32.mrf.mxu2  ;;  %v1406_v20 = vpop.f32.mrf.mxu3 }
 0x990   :  { %v1432_v35 = vadd.f32 %v1431_v25, %v1387_v23  ;;  %v1351_v2 = vpop.f32.mrf.mxu0  ;;  %v1370_v13 = vpop.f32.mrf.mxu1 }
 0x991   :  { %v1436_v61 = vadd.f32 %v1370_v13, %v1351_v2 }
 0x992   :  { %v1433_v48 = vadd.f32 %v1432_v35, %v1406_v20 }
 0x994   :  { %1434 = vadd.xlane.f32.xlu2 %v1433_v48 }
 0x997   :  { %v1389_v44 = vpop.f32.mrf.mxu2  ;;  %v1408_v45 = vpop.f32.mrf.mxu3 }
 0x998   :  { %v1437_v5 = vadd.f32 %v1436_v61, %v1389_v44  ;;  %1614 = vperm.xlu0 %2042, %v2005_v50   ;;  %v1999_v50 = vld [vmem:[%s3586_s5 + $0x88] sm:$0xff] }
 0x999   :  { %v2003_v61 = vld [vmem:[%s3586_s5 + $0x128] sm:$0xff] }
 0x99a   :  { %v1438_v12 = vadd.f32 %v1437_v5, %v1408_v45 }
 0x99c   :  { %1439 = vadd.xlane.f32.xlu1 %v1438_v12 }
 0x9ac   :  { %1609 = vperm.xlu2 %2043, %v2004_v57  }
 0x9b5   :  { %1563 = vperm.xlu1 %2041, %v1998_v0  }
 0x9f7   :  { %v1425_v17 = vpop.xlane.xlu0 %1424 }
 0x9f8   :  { %v1441_v3 = vmul.f32 %v1425_v17, %v2252_v41 }
 0x9fa   :  { %v3318_v1 = vsub.f32 %v1344_v31, %v1441_v3  ;;  %v3320_v63 = vsub.f32 %v1363_v49, %v1441_v3  ;;  %v3322_v34 = vsub.f32 %v1382_v29, %v1441_v3  ;;  %v3324_v51 = vsub.f32 %v1401_v55, %v1441_v3 }
 0x9fc   :  { %v1461_v14 = vmul.f32 %v3318_v1, %v3318_v1  ;;  %v1462_v60 = vmul.f32 %v3320_v63, %v3320_v63  ;;  %v1463_v22 = vmul.f32 %v3322_v34, %v3322_v34  ;;  %v1464_v58 = vmul.f32 %v3324_v51, %v3324_v51 }
 0x9fe   :  { %v1477_v30 = vadd.f32 %v1462_v60, %v1461_v14 }
 0x9ff   :  { %v1430_v8 = vpop.xlane.xlu1 %1429 }
 0xa00   :  { %v1442_v4 = vmul.f32 %v1430_v8, %v2252_v41  ;;  %v1478_v24 = vadd.f32 %v1477_v30, %v1463_v22 }
 0xa02   :  { %v3335_v32 = vsub.f32 %v1346_v6, %v1442_v4  ;;  %v3337_v39 = vsub.f32 %v1365_v59, %v1442_v4  ;;  %v1479_v52 = vadd.f32 %v1478_v24, %v1464_v58  ;;  %v3339_v42 = vsub.f32 %v1384_v40, %v1442_v4 }
 0xa03   :  { %v3341_v28 = vsub.f32 %v1403_v33, %v1442_v4 }
 0xa04   :  { %1480 = vadd.xlane.f32.xlu0 %v1479_v52  ;;  %v1465_v21 = vmul.f32 %v3335_v32, %v3335_v32  ;;  %v1466_v62 = vmul.f32 %v3337_v39, %v3337_v39  ;;  %v1467_v36 = vmul.f32 %v3339_v42, %v3339_v42 }
 0xa05   :  { %v1468_v53 = vmul.f32 %v3341_v28, %v3341_v28 }
 0xa06   :  { %v1482_v18 = vadd.f32 %v1466_v62, %v1465_v21 }
 0xa07   :  { %v1435_v7 = vpop.xlane.xlu2 %1434 }
 0xa08   :  { %v1443_v43 = vmul.f32 %v1435_v7, %v2252_v41  ;;  %v1483_v37 = vadd.f32 %v1482_v18, %v1467_v36 }
 0xa0a   :  { %v3352_v19 = vsub.f32 %v1349_v54, %v1443_v43  ;;  %v3354_v9 = vsub.f32 %v1368_v46, %v1443_v43  ;;  %v1484_v10 = vadd.f32 %v1483_v37, %v1468_v53  ;;  %v3356_v31 = vsub.f32 %v1387_v23, %v1443_v43 }
 0xa0b   :  { %v3358_v49 = vsub.f32 %v1406_v20, %v1443_v43 }
 0xa0c   :  { %1485 = vadd.xlane.f32.xlu2 %v1484_v10  ;;  %v1469_v27 = vmul.f32 %v3352_v19, %v3352_v19  ;;  %v1470_v29 = vmul.f32 %v3354_v9, %v3354_v9  ;;  %v1471_v55 = vmul.f32 %v3356_v31, %v3356_v31 }
 0xa0d   :  { %v1472_v16 = vmul.f32 %v3358_v49, %v3358_v49 }
 0xa0e   :  { %v1487_v47 = vadd.f32 %v1470_v29, %v1469_v27 }
 0xa0f   :  { %v1440_v6 = vpop.xlane.xlu1 %1439  ;;  %v3396_v5 = vpop.permute.xlu2 %1609 }
 0xa10   :  { %v1444_v59 = vmul.f32 %v1440_v6, %v2252_v41  ;;  %v1488_v11 = vadd.f32 %v1487_v47, %v1471_v55 }
 0xa12   :  { %v3369_v40 = vsub.f32 %v1351_v2, %v1444_v59  ;;  %v3371_v33 = vsub.f32 %v1370_v13, %v1444_v59  ;;  %v1489_v15 = vadd.f32 %v1488_v11, %v1472_v16  ;;  %v3373_v54 = vsub.f32 %v1389_v44, %v1444_v59  ;;  %v2002_v13 = vld [vmem:[%s3586_s5 + $0x120] sm:$0xff]  ;;  %v3394_v44 = vpop.permute.xlu0 %1614 }
 0xa13   :  { %v3375_v46 = vsub.f32 %v1408_v45, %v1444_v59 }
 0xa14   :  { %1490 = vadd.xlane.f32.xlu0 %v1489_v15  ;;  %v1473_v56 = vmul.f32 %v3369_v40, %v3369_v40  ;;  %v1474_v25 = vmul.f32 %v3371_v33, %v3371_v33  ;;  %v1475_v23 = vmul.f32 %v3373_v54, %v3373_v54 }
 0xa15   :  { %v1476_v35 = vmul.f32 %v3375_v46, %v3375_v46 }
 0xa16   :  { %v1492_v20 = vadd.f32 %v1474_v25, %v1473_v56 }
 0xa18   :  { %v1493_v48 = vadd.f32 %v1492_v20, %v1475_v23 }
 0xa1a   :  { %v1494_v2 = vadd.f32 %v1493_v48, %v1476_v35 }
 0xa1c   :  { %1495 = vadd.xlane.f32.xlu1 %v1494_v2 }
 0xa24   :  { %1599 = vperm.xlu2 %2043, %v2002_v13  }
 0xa27   :  { %v3400_v30 = vpop.permute.xlu1 %1563 }
 0xa28   :  { %1568 = vperm.xlu0 %2042, %v1999_v50  }
 0xa35   :  { %1604 = vperm.xlu1 %2041, %v2003_v61  }
 0xa77   :  { %v1481_v45 = vpop.xlane.xlu0 %1480 }
 0xa78   :  { %v1497_v12 = vmul.f32 %v1481_v45, %v2252_v41 }
 0xa7a   :  { %v1501_v57 = vadd.f32 1e-05, %v1497_v12 }
 0xa7c   :  { %2059 = vrsqrt.f32 %v1501_v57  ;;  %vm1511_vm13 = vweird.f32 %v1501_v57 }
 0xa7f   :  { %v1486_v0 = vpop.xlane.xlu2 %1485 }
 0xa80   :  { %v1498_v17 = vmul.f32 %v1486_v0, %v2252_v41 }
 0xa82   :  { %v2060_v3 = vpop.eup %2059  ;;  %v1502_v14 = vadd.f32 1e-05, %v1498_v17 }
 0xa83   :  { %v1506_v60 = vmul.f32 %v2060_v3, %v1501_v57  ;;  %vm1512_vm9 = vweird.f32 %v2060_v3 }
 0xa84   :  { %2061 = vrsqrt.f32 %v1502_v14  ;;  %vm1513_vm14 = vmor %vm1511_vm13, %vm1512_vm9  ;;  %vm1521_vm3 = vweird.f32 %v1502_v14  ;;  %vm1712_vm9 = vcmask 15360  }
 0xa85   :  { %v1507_v22 = vmul.f32 %v2060_v3, %v1506_v60 }
 0xa87   :  { %v1508_v8 = vmul.f32 0.5, %v1507_v22  ;;  %v1491_v4 = vpop.xlane.xlu0 %1490  ;;  %v3412_v55 = vpop.permute.xlu2 %1599 }
 0xa88   :  { %v1499_v58 = vmul.f32 %v1491_v4, %v2252_v41 }
 0xa89   :  { %v1509_v24 = vsub.f32 1.5, %v1508_v8 }
 0xa8a   :  { %v2062_v52 = vpop.eup %2061  ;;  %v1503_v21 = vadd.f32 1e-05, %v1499_v58 }
 0xa8b   :  { %v1510_v62 = vmul.f32 %v2060_v3, %v1509_v24  ;;  %v1516_v36 = vmul.f32 %v2062_v52, %v1502_v14  ;;  %vm1522_vm4 = vweird.f32 %v2062_v52 }
 0xa8c   :  { %2063 = vrsqrt.f32 %v1503_v21  ;;  %vm1531_vm1 = vweird.f32 %v1503_v21  ;;  %vm1523_vm0 = vmor %vm1521_vm3, %vm1522_vm4 }
 0xa8d   :  { %v3403_v18 = vsel %vm1513_vm14, %v2060_v3, %v1510_v62  ;;  %v1517_v53 = vmul.f32 %v2062_v52, %v1516_v36 }
 0xa8e   :  { %v1545_v7 = vmul.f32 %v3403_v18, %v3318_v1  ;;  %v1546_v43 = vmul.f32 %v3403_v18, %v3320_v63 }
 0xa8f   :  { %v1496_v37 = vpop.xlane.xlu1 %1495  ;;  %v1518_v16 = vmul.f32 0.5, %v1517_v53  ;;  %v1547_v53 = vmul.f32 %v3403_v18, %v3322_v34 }
 0xa90   :  { %v1500_v10 = vmul.f32 %v1496_v37, %v2252_v41  ;;  %v1581_v27 = vmul.f32 %v3400_v30, %v1545_v7  ;;  %v1582_v29 = vmul.f32 %v3400_v30, %v1546_v43  ;;  %v1548_v37 = vmul.f32 %v3403_v18, %v3324_v51 }
 0xa91   :  { %v1519_v15 = vsub.f32 1.5, %v1518_v16 }
 0xa92   :  { %v2064_v47 = vpop.eup %2063  ;;  %v1504_v6 = vadd.f32 1e-05, %v1500_v10  ;;  %v3415_v59 = vadd.f32 %v3412_v55, %v1581_v27  ;;  %v3418_v1 = vadd.f32 %v3412_v55, %v1582_v29  ;;  %v1584_v16 = vmul.f32 %v3400_v30, %v1548_v37 }
 0xa93   :  { %v1526_v63 = vmul.f32 %v2064_v47, %v1503_v21  ;;  %vm1532_vm15 = vweird.f32 %v2064_v47  ;;  %v1520_v20 = vmul.f32 %v2062_v52, %v1519_v15 }
 0xa94   :  { %2065 = vrsqrt.f32 %v1504_v6  ;;  %v1633_v41 = vadd.f32 %v3418_v1, %v3415_v59  ;;  %vm1533_vm2 = vmor %vm1531_vm1, %vm1532_vm15  ;;  %vm1541_vm6 = vweird.f32 %v1504_v6 }
 0xa95   :  { %v1527_v11 = vmul.f32 %v2064_v47, %v1526_v63  ;;  %v1524_v57 = vsel %vm1523_vm0, %v2062_v52, %v1520_v20  ;;  %v2141_v20 = vmov 256.0  }
 0xa96   :  { %1634 = vadd.xlane.f32.xlu2 %v1633_v41  ;;  %v1549_v58 = vmul.f32 %v1524_v57, %v3335_v32  ;;  %v1551_v41 = vmul.f32 %v1524_v57, %v3339_v42  ;;  %2067 = vrcp.f32 %v2141_v20 }
 0xa97   :  { %v1528_v56 = vmul.f32 0.5, %v1527_v11  ;;  %v1552_v11 = vmul.f32 %v1524_v57, %v3341_v28 }
 0xa99   :  { %v1529_v25 = vsub.f32 1.5, %v1528_v56 }
 0xa9a   :  { %v2066_v23 = vpop.eup %2065  ;;  %v1569_v8 = vpop.permute.xlu0 %1568 }
 0xa9b   :  { %v1530_v35 = vmul.f32 %v2064_v47, %v1529_v25  ;;  %v1536_v48 = vmul.f32 %v2066_v23, %v1504_v6  ;;  %vm1542_vm5 = vweird.f32 %v2066_v23  ;;  %v1585_v62 = vmul.f32 %v1569_v8, %v1549_v58 }
 0xa9c   :  { %vm1543_vm7 = vmor %vm1541_vm6, %vm1542_vm5  ;;  %v1588_v15 = vmul.f32 %v1569_v8, %v1552_v11  ;;  %v3490_v25 = vadd.f32 %v3412_v55, %v1584_v16 }
 0xa9d   :  { %v1534_v2 = vsel %vm1533_vm2, %v2064_v47, %v1530_v35  ;;  %v1537_v13 = vmul.f32 %v2066_v23, %v1536_v48  ;;  %v2068_v35 = vpop.eup %2067 }
 0xa9e   :  { %v1553_v50 = vmul.f32 %v1534_v2, %v3352_v19  ;;  %v1554_v61 = vmul.f32 %v1534_v2, %v3354_v9  ;;  %v1555_v45 = vmul.f32 %v1534_v2, %v3356_v31  ;;  %v1556_v12 = vmul.f32 %v1534_v2, %v3358_v49 }
 0xa9f   :  { %v1538_v0 = vmul.f32 0.5, %v1537_v13  ;;  %v1646_v48 = vmul.f32 256.0, %v2068_v35  ;;  %vm1650_vm8 = vweird.f32 %v2068_v35 }
 0xaa0   :  { %v1589_v17 = vmul.f32 %v3315_v38, %v1553_v50  ;;  %v1590_v3 = vmul.f32 %v3315_v38, %v1554_v61  ;;  %v1591_v60 = vmul.f32 %v3315_v38, %v1555_v45  ;;  %v1592_v14 = vmul.f32 %v3315_v38, %v1556_v12 }
 0xaa1   :  { %v1539_v22 = vsub.f32 1.5, %v1538_v0  ;;  %v1550_v38 = vmul.f32 %v1524_v57, %v3337_v39  ;;  %v1647_v2 = vsub.f32 1.0, %v1646_v48 }
 0xaa2   :  { %v3431_v19 = vadd.f32 %v3396_v5, %v1589_v17  ;;  %v3434_v9 = vadd.f32 %v3396_v5, %v1590_v3  ;;  %v3437_v31 = vadd.f32 %v3396_v5, %v1591_v60  ;;  %v3440_v49 = vadd.f32 %v3396_v5, %v1592_v14 }
 0xaa3   :  { %v1540_v4 = vmul.f32 %v2066_v23, %v1539_v22  ;;  %v1586_v36 = vmul.f32 %v1569_v8, %v1550_v38  ;;  %v1648_v13 = vmul.f32 %v2068_v35, %v1647_v2 }
 0xaa4   :  { %v1639_v24 = vadd.f32 %v3434_v9, %v3431_v19  ;;  %v1662_v52 = vadd.f32 %v3440_v49, %v3437_v31 }
 0xaa5   :  { %v1544_v21 = vsel %vm1543_vm7, %v2066_v23, %v1540_v4  ;;  %v1649_v61 = vadd.f32 %v2068_v35, %v1648_v13 }
 0xaa6   :  { %1640 = vadd.xlane.f32.xlu0 %v1639_v24  ;;  %1663 = vadd.xlane.f32.xlu1 %v1662_v52  ;;  %v1559_v5 = vmul.f32 %v1544_v21, %v3373_v54  ;;  %v1560_v7 = vmul.f32 %v1544_v21, %v3375_v46  ;;  %v1557_v32 = vmul.f32 %v1544_v21, %v3369_v40 }
 0xaa7   :  { %v1605_v43 = vpop.permute.xlu1 %1604  ;;  %v1558_v39 = vmul.f32 %v1544_v21, %v3371_v33  ;;  %v1651_v12 = vsel %vm1650_vm8, %v2068_v35, %v1649_v61 }
 0xaa8   :  { %v3456_v10 = vadd.f32 %v1605_v43, %v1585_v62  ;;  %v3458_v27 = vadd.f32 %v1605_v43, %v1586_v36  ;;  %v1595_v29 = vmul.f32 %v3313_v26, %v1559_v5  ;;  %v1596_v54 = vmul.f32 %v3313_v26, %v1560_v7 }
 0xaa9   :  { %v1593_v46 = vmul.f32 %v3313_v26, %v1557_v32  ;;  %v1594_v40 = vmul.f32 %v3313_v26, %v1558_v39  ;;  %v1583_v26 = vmul.f32 %v3400_v30, %v1547_v53  ;;  %v3494_v30 = vadd.f32 %v1605_v43, %v1588_v15 }
 0xaaa   :  { %v3465_v33 = vadd.f32 %v3394_v44, %v1595_v29  ;;  %v3468_v34 = vadd.f32 %v3394_v44, %v1596_v54  ;;  %v1636_v6 = vadd.f32 %v3458_v27, %v3456_v10  ;;  %v2024_v54 = vld [vmem:[%s3588_s7] sm:$0xff] }
 0xaab   :  { %v3471_v51 = vadd.f32 %v3394_v44, %v1593_v46  ;;  %v3474_v18 = vadd.f32 %v3394_v44, %v1594_v40  ;;  %v1587_v44 = vmul.f32 %v1569_v8, %v1551_v41  ;;  %v3487_v56 = vadd.f32 %v3412_v55, %v1583_v26  ;;  %v2025_v40 = vld [vmem:[%s3588_s7 + $0x8] sm:$0xff] }
 0xaac   :  { %v1665_v47 = vadd.f32 %v3468_v34, %v3465_v33 }
 0xaad   :  { %v1642_v63 = vadd.f32 %v3474_v18, %v3471_v51  ;;  %v3492_v23 = vadd.f32 %v1605_v43, %v1587_v44  ;;  %v1656_v42 = vadd.f32 %v3490_v25, %v3487_v56  ;;  %v1677_v43 = vld [vmem:[%s3587_s6] sm:$0x1] }
 0xaae   :  { %1666 = vadd.xlane.f32.xlu0 %v1665_v47  ;;  %1637 = vadd.xlane.f32.xlu1 %v1636_v6 }
 0xaaf   :  { %1643 = vadd.xlane.f32.xlu2 %v1642_v63  ;;  %v1659_v28 = vadd.f32 %v3494_v30, %v3492_v23 }
 0xab6   :  { %1657 = vadd.xlane.f32.xlu0 %v1656_v42 }
 0xab7   :  { %1660 = vadd.xlane.f32.xlu2 %v1659_v28 }
 0xb09   :  { %v1635_v50 = vpop.xlane.xlu2 %1634 }
 0xb0a   :  { %v1652_v24 = vmul.f32 %v1651_v12, %v1635_v50 }
 0xb19   :  { %v1641_v55 = vpop.xlane.xlu0 %1640  ;;  %v1664_v45 = vpop.xlane.xlu1 %1663 }
 0xb1a   :  { %v1654_v57 = vmul.f32 %v1651_v12, %v1641_v55  ;;  %v1670_v0 = vmul.f32 %v1664_v45, %v1651_v12 }
 0xb1c   :  { %v1675_v22 = vsel %vm1672_vm10, %v1654_v57, %v1670_v0 }
 0xb21   :  { %v1667_v17 = vpop.xlane.xlu0 %1666  ;;  %v1638_v58 = vpop.xlane.xlu1 %1637 }
 0xb22   :  { %v1671_v3 = vmul.f32 %v1667_v17, %v1651_v12  ;;  %v1644_v60 = vpop.xlane.xlu2 %1643  ;;  %v1653_v62 = vmul.f32 %v1651_v12, %v1638_v58 }
 0xb23   :  { %v1655_v14 = vmul.f32 %v1651_v12, %v1644_v60 }
 0xb25   :  { %v1676_v8 = vsel %vm1672_vm10, %v1655_v14, %v1671_v3 }
 0xb26   :  { %v1679_v4 = vpack.c.bf16 %v1676_v8, %v1675_v22 }
 0xb28   :  { %1689 = vmatpush.bf16.msrb.mxu0 %v1679_v4 }
 0xb29   :  { %v1658_v38 = vpop.xlane.xlu0 %1657 }
 0xb2a   :  { %v1668_v52 = vmul.f32 %v1658_v38, %v1651_v12  ;;  %v1661_v21 = vpop.xlane.xlu2 %1660 }
 0xb2b   :  { %v1669_v36 = vmul.f32 %v1661_v21, %v1651_v12 }
 0xb2c   :  { %v1673_v5 = vsel %vm1672_vm10, %v1652_v24, %v1668_v52 }
 0xb2d   :  { %v1674_v7 = vsel %vm1672_vm10, %v1653_v62, %v1669_v36 }
 0xb2e   :  { %v1678_v32 = vpack.c.bf16 %v1674_v7, %v1673_v5  ;;  %v2142_v7 = vmov 1  }
 0xb30   :  { %1690 = vmatpush.bf16.msrb.mxu0 %v1678_v32 }
 0xb33   :  { %2006 = vmatmul.msk.bf16.vlgmr.msrb.gmra.mxu0 %vm3596_vm11, %v1677_v43 }
 0xbb0   :  { %v1692_v39 = vpop.f32.mrf.mxu0 }
 0xbb1   :  { %v1696_v53 = vmax.f32 %v1692_v39, 0.0 }
 0xbb3   :  { %v1701_v37 = vpack.c.bf16 %v1696_v53, %v1696_v53 }
 0xbb5   :  { %v1721_v29 = vsel %vm1719_vm12, %v1701_v37, 0 }
 0xbb6   :  { %1730 = vmatpush.bf16.msra.mxu1 %v1721_v29 }
 0xbb8   :  { %v1694_v46 = vpop.f32.mrf.mxu0 }
 0xbb9   :  { %2015 = vmatmul.msk.bf16.vlgmr.msra.gmra.mxu1 %vm1712_vm9, %v2024_v54 }
 0xbc9   :  { %2016 = vmatmul.msk.bf16.gmra.mxu1 %vm1712_vm9, %v2025_v40 }
 0xc36   :  { %v1732_v47 = vpop.f32.mrf.mxu1 }
 0xc37   :  { %v2017_v6 = vmul.f32 -1.442695, %v1732_v47 }
 0xc39   :  { %2069 = vpow2.f32 %v2017_v6 }
 0xc3e   :  { %v1734_v26 = vpop.f32.mrf.mxu1 }
 0xc3f   :  { %v2070_v16 = vpop.eup %2069  ;;  %v2018_v63 = vmul.f32 -1.442695, %v1734_v26 }
 0xc40   :  { %v1754_v41 = vadd.f32 1.0, %v2070_v16 }
 0xc41   :  { %2071 = vpow2.f32 %v2018_v63 }
 0xc42   :  { %2073 = vrcp.f32 %v1754_v41  ;;  %v1769_v48 = vand.u32 2147483648, %v1754_v41  ;;  %v1767_v13 = vand.u32 2147483647, %v1754_v41  ;;  %vm1763_vm14 = vweird.f32 %v1754_v41 }
 0xc44   :  { %v1770_v0 = vor.u32 1.1754944e-38, %v1769_v48  ;;  %vm1768_vm4 = vcmp.eq.f32.partialorder %v1767_v13, 8.507059e+37 }
 0xc46   :  { %v1737_v11 = vpop.f32.mrf.mxu1 }
 0xc47   :  { %v2072_v44 = vpop.eup %2071  ;;  %v2019_v15 = vmul.f32 -1.442695, %v1737_v11 }
 0xc48   :  { %v2074_v42 = vpop.eup %2073  ;;  %v1755_v28 = vadd.f32 1.0, %v2072_v44 }
 0xc49   :  { %2075 = vpow2.f32 %v2019_v15  ;;  %v1759_v20 = vmul.f32 %v2074_v42, %v1754_v41  ;;  %vm1764_vm13 = vweird.f32 %v2074_v42 }
 0xc4a   :  { %2077 = vrcp.f32 %v1755_v28  ;;  %vm1765_vm15 = vmor %vm1763_vm14, %vm1764_vm13  ;;  %v1784_v22 = vand.u32 2147483648, %v1755_v28  ;;  %v1782_v4 = vand.u32 2147483647, %v1755_v28  ;;  %vm1778_vm2 = vweird.f32 %v1755_v28 }
 0xc4b   :  { %v1760_v35 = vsub.f32 1.0, %v1759_v20 }
 0xc4c   :  { %v1785_v21 = vor.u32 1.1754944e-38, %v1784_v22  ;;  %vm1783_vm0 = vcmp.eq.f32.partialorder %v1782_v4, 8.507059e+37 }
 0xc4d   :  { %v1761_v2 = vmul.f32 %v2074_v42, %v1760_v35 }
 0xc4e   :  { %v1739_v55 = vpop.f32.mrf.mxu1 }
 0xc4f   :  { %v2076_v50 = vpop.eup %2075  ;;  %v2020_v61 = vmul.f32 -1.442695, %v1739_v55  ;;  %v1762_v45 = vadd.f32 %v2074_v42, %v1761_v2 }
 0xc50   :  { %v2078_v12 = vpop.eup %2077  ;;  %v1756_v57 = vadd.f32 1.0, %v2076_v50 }
 0xc51   :  { %2079 = vpow2.f32 %v2020_v61  ;;  %v1766_v17 = vsel %vm1765_vm15, %v2074_v42, %v1762_v45  ;;  %v1774_v3 = vmul.f32 %v2078_v12, %v1755_v28  ;;  %vm1779_vm1 = vweird.f32 %v2078_v12  ;;  %v1850_v42 = vld [vmem:[%s3581_s0 + $0x40] sm:$0xff]  ;;  %v1851_v28 = vld [vmem:[%s3581_s0 + $0x48] sm:$0xff] }
 0xc52   :  { %2081 = vrcp.f32 %v1756_v57  ;;  %v1771_v60 = vsel %vm1768_vm4, %v1770_v0, %v1766_v17  ;;  %vm1780_vm3 = vmor %vm1778_vm2, %vm1779_vm1  ;;  %v1799_v43 = vand.u32 2147483648, %v1756_v57  ;;  %v1797_v53 = vand.u32 2147483647, %v1756_v57  ;;  %v1846_v61 = vld [vmem:[%s3581_s0] sm:$0xff]  ;;  %v1847_v45 = vld [vmem:[%s3581_s0 + $0x8] sm:$0xff] }
 0xc53   :  { %1820 = vperm.xlu1 %2041, %v1771_v60   ;;  %v1775_v14 = vsub.f32 1.0, %v1774_v3  ;;  %vm1793_vm6 = vweird.f32 %v1756_v57  ;;  %v1905_v0 = vld [vmem:[%s3581_s0 + $0x38] sm:$0xff] }
 0xc54   :  { %v1800_v54 = vor.u32 1.1754944e-38, %v1799_v43  ;;  %vm1798_vm8 = vcmp.eq.f32.partialorder %v1797_v53, 8.507059e+37 }
 0xc55   :  { %v1776_v8 = vmul.f32 %v2078_v12, %v1775_v14 }
 0xc57   :  { %v2080_v58 = vpop.eup %2079  ;;  %v1777_v38 = vadd.f32 %v2078_v12, %v1776_v8 }
 0xc58   :  { %v2082_v24 = vpop.eup %2081  ;;  %v1757_v52 = vadd.f32 1.0, %v2080_v58 }
 0xc59   :  { %v1781_v62 = vsel %vm1780_vm3, %v2078_v12, %v1777_v38  ;;  %v1789_v36 = vmul.f32 %v2082_v24, %v1756_v57  ;;  %vm1794_vm5 = vweird.f32 %v2082_v24 }
 0xc5a   :  { %2083 = vrcp.f32 %v1757_v52  ;;  %v1786_v5 = vsel %vm1783_vm0, %v1785_v21, %v1781_v62  ;;  %vm1795_vm7 = vmor %vm1793_vm6, %vm1794_vm5  ;;  %v1814_v26 = vand.u32 2147483648, %v1757_v52  ;;  %v1812_v63 = vand.u32 2147483647, %v1757_v52  ;;  %v1902_v62 = vld [vmem:[%s3581_s0 + $0x10] sm:$0xff] }
 0xc5b   :  { %2044 = vset.pattern.permute.xlu1 %v2142_v7  ;;  %1825 = vperm.xlu0 %2042, %v1786_v5   ;;  %v1790_v32 = vsub.f32 1.0, %v1789_v36  ;;  %vm1808_vm11 = vweird.f32 %v1757_v52  ;;  %v1903_v36 = vld [vmem:[%s3581_s0 + $0x18] sm:$0xff] }
 0xc5c   :  { %1879 = vperm.xlu1 %2044, %v1771_v60   ;;  %v1815_v11 = vor.u32 1.1754944e-38, %v1814_v26  ;;  %vm1813_vm9 = vcmp.eq.f32.partialorder %v1812_v63, 8.507059e+37  ;;  %v1853_v26 = vld [vmem:[%s3581_s0 + $0x68] sm:$0xff] }
 0xc5d   :  { %v1791_v39 = vmul.f32 %v2082_v24, %v1790_v32 }
 0xc5f   :  { %v1792_v37 = vadd.f32 %v2082_v24, %v1791_v39 }
 0xc60   :  { %v2084_v29 = vpop.eup %2083 }
 0xc61   :  { %v1804_v46 = vmul.f32 %v2084_v29, %v1757_v52  ;;  %v1796_v40 = vsel %vm1795_vm7, %v2082_v24, %v1792_v37  ;;  %vm1809_vm10 = vweird.f32 %v2084_v29  ;;  %v1848_v24 = vld [vmem:[%s3581_s0 + $0x20] sm:$0xff] }
 0xc62   :  { %v1801_v47 = vsel %vm1798_vm8, %v1800_v54, %v1796_v40  ;;  %vm1810_vm12 = vmor %vm1808_vm11, %vm1809_vm10 }
 0xc63   :  { %1830 = vperm.xlu2 %2043, %v1801_v47   ;;  %v1805_v6 = vsub.f32 1.0, %v1804_v46  ;;  %v1908_v46 = vld [vmem:[%s3581_s0 + $0x70] sm:$0xff] }
 0xc65   :  { %v1806_v16 = vmul.f32 %v2084_v29, %v1805_v6  ;;  %v1852_v6 = vld [vmem:[%s3581_s0 + $0x60] sm:$0xff] }
 0xc67   :  { %v1807_v41 = vadd.f32 %v2084_v29, %v1806_v16 }
 0xc69   :  { %v1811_v44 = vsel %vm1810_vm12, %v2084_v29, %v1807_v41 }
 0xc6a   :  { %v1816_v15 = vsel %vm1813_vm9, %v1815_v11, %v1811_v44 }
 0xc6b   :  { %2045 = vset.pattern.permute.xlu2 %v2142_v7  ;;  %1891 = vperm.xlu1 %2044, %v1816_v15  }
 0xc6c   :  { %1835 = vperm.xlu0 %2042, %v1816_v15   ;;  %1883 = vperm.xlu2 %2045, %v1786_v5  }
 0xc74   :  { %2046 = vset.pattern.permute.xlu0 %v2142_v7 }
 0xc75   :  { %1887 = vperm.xlu0 %2046, %v1801_v47  }
 0xcbd   :  { %v1831_v20 = vpop.permute.xlu2 %1830 }
 0xcbe   :  { %v1842_v35 = vmul.f32 %v1831_v20, %v3431_v19  ;;  %v1843_v48 = vmul.f32 %v1831_v20, %v3434_v9  ;;  %v1904_v9 = vld [vmem:[%s3581_s0 + $0x30] sm:$0xff] }
 0xcc0   :  { %v1858_v2 = vadd.f32 %v1850_v42, %v1842_v35  ;;  %v1859_v13 = vadd.f32 %v1851_v28, %v1843_v48  ;;  %v1906_v35 = vld [vmem:[%s3581_s0 + $0x50] sm:$0xff] }
 0xcc2   :  { %v1866_v55 = vmax.f32 %v1858_v2, 0.0  ;;  %v1867_v50 = vmax.f32 %v1859_v13, 0.0 }
 0xcc4   :  { %1874 = vst [vmem:[#allocation2 + $0x40] sm:$0xff] %v1866_v55 }
 0xcc5   :  { %1875 = vst [vmem:[#allocation2 + $0x48] sm:$0xff] %v1867_v50  ;;  %v1821_v12 = vpop.permute.xlu1 %1820 }
 0xcc6   :  { %v1838_v57 = vmul.f32 %v1821_v12, %v3415_v59  ;;  %v1839_v19 = vmul.f32 %v1821_v12, %v3418_v1  ;;  %v1884_v17 = vpop.permute.xlu2 %1883 }
 0xcc7   :  { %v1896_v3 = vmul.f32 %v1884_v17, %v3492_v23  ;;  %v1897_v60 = vmul.f32 %v1884_v17, %v3494_v30  ;;  %v1849_v23 = vld [vmem:[%s3581_s0 + $0x28] sm:$0xff] }
 0xcc8   :  { %v1854_v14 = vadd.f32 %v1846_v61, %v1838_v57  ;;  %v1855_v22 = vadd.f32 %v1847_v45, %v1839_v19 }
 0xcc9   :  { %v1912_v8 = vadd.f32 %v1904_v9, %v1896_v3  ;;  %v1913_v4 = vadd.f32 %v1905_v0, %v1897_v60 }
 0xcca   :  { %v1862_v59 = vmax.f32 %v1854_v14, 0.0  ;;  %v1863_v58 = vmax.f32 %v1855_v22, 0.0 }
 0xccb   :  { %v1920_v1 = vmax.f32 %v1912_v8, 0.0  ;;  %v1921_v38 = vmax.f32 %v1913_v4, 0.0 }
 0xccc   :  { %1870 = vst [vmem:[#allocation2] sm:$0xff] %v1862_v59 }
 0xccd   :  { %1871 = vst [vmem:[#allocation2 + $0x8] sm:$0xff] %v1863_v58  ;;  %v1826_v52 = vpop.permute.xlu0 %1825 }
 0xcce   :  { %1928 = vst [vmem:[#allocation2 + $0x30] sm:$0xff] %v1920_v1  ;;  %v1840_v30 = vmul.f32 %v1826_v52, %v3456_v10  ;;  %v1841_v21 = vmul.f32 %v1826_v52, %v3458_v27  ;;  %v1880_v5 = vpop.permute.xlu1 %1879 }
 0xccf   :  { %1929 = vst [vmem:[#allocation2 + $0x38] sm:$0xff] %v1921_v38  ;;  %v1894_v7 = vmul.f32 %v1880_v5, %v3487_v56  ;;  %v1895_v32 = vmul.f32 %v1880_v5, %v3490_v25  ;;  %v1909_v56 = vld [vmem:[%s3581_s0 + $0x78] sm:$0xff] }
 0xcd0   :  { %v1856_v43 = vadd.f32 %v1848_v24, %v1840_v30  ;;  %v1857_v39 = vadd.f32 %v1849_v23, %v1841_v21 }
 0xcd1   :  { %v1910_v53 = vadd.f32 %v1902_v62, %v1894_v7  ;;  %v1911_v10 = vadd.f32 %v1903_v36, %v1895_v32 }
 0xcd2   :  { %v1864_v37 = vmax.f32 %v1856_v43, 0.0  ;;  %v1865_v27 = vmax.f32 %v1857_v39, 0.0 }
 0xcd3   :  { %v1918_v29 = vmax.f32 %v1910_v53, 0.0  ;;  %v1919_v54 = vmax.f32 %v1911_v10, 0.0 }
 0xcd4   :  { %1872 = vst [vmem:[#allocation2 + $0x20] sm:$0xff] %v1864_v37 }
 0xcd5   :  { %1873 = vst [vmem:[#allocation2 + $0x28] sm:$0xff] %v1865_v27 }
 0xcd6   :  { %1926 = vst [vmem:[#allocation2 + $0x10] sm:$0xff] %v1918_v29 }
 0xcd7   :  { %1927 = vst [vmem:[#allocation2 + $0x18] sm:$0xff] %v1919_v54 }
 0xcdd   :  { %v1892_v25 = vpop.permute.xlu1 %1891 }
 0xcde   :  { %v1900_v40 = vmul.f32 %v1892_v25, %v3465_v33  ;;  %v1901_v47 = vmul.f32 %v1892_v25, %v3468_v34  ;;  %v1836_v16 = vpop.permute.xlu0 %1835 }
 0xcdf   :  { %v1844_v63 = vmul.f32 %v1836_v16, %v3471_v51  ;;  %v1845_v41 = vmul.f32 %v1836_v16, %v3474_v18  ;;  %v1907_v51 = vld [vmem:[%s3581_s0 + $0x58] sm:$0xff]  ;;  %s2144_s0 = smov 512  }
 0xce0   :  { %v1916_v11 = vadd.f32 %v1908_v46, %v1900_v40  ;;  %v1917_v44 = vadd.f32 %v1909_v56, %v1901_v47 }
 0xce1   :  { %v1860_v15 = vadd.f32 %v1852_v6, %v1844_v63  ;;  %v1861_v42 = vadd.f32 %v1853_v26, %v1845_v41 }
 0xce2   :  { %v1924_v33 = vmax.f32 %v1916_v11, 0.0  ;;  %v1925_v28 = vmax.f32 %v1917_v44, 0.0 }
 0xce3   :  { %v1868_v34 = vmax.f32 %v1860_v15, 0.0  ;;  %v1869_v20 = vmax.f32 %v1861_v42, 0.0 }
 0xce4   :  { %1932 = vst [vmem:[#allocation2 + $0x70] sm:$0xff] %v1924_v33 }
 0xce5   :  { %1933 = vst [vmem:[#allocation2 + $0x78] sm:$0xff] %v1925_v28 }
 0xce6   :  { %1876 = vst [vmem:[#allocation2 + $0x60] sm:$0xff] %v1868_v34 }
 0xce7   :  { %1877 = vst [vmem:[#allocation2 + $0x68] sm:$0xff] %v1869_v20  ;;  %v1888_v18 = vpop.permute.xlu0 %1887 }
 0xce8   :  { %v1898_v48 = vmul.f32 %v1888_v18, %v3437_v31  ;;  %v1899_v2 = vmul.f32 %v1888_v18, %v3440_v49 }
 0xcea   :  { %v1914_v13 = vadd.f32 %v1906_v35, %v1898_v48  ;;  %v1915_v55 = vadd.f32 %v1907_v51, %v1899_v2 }
 0xcec   :  { %v1922_v50 = vmax.f32 %v1914_v13, 0.0  ;;  %v1923_v61 = vmax.f32 %v1915_v55, 0.0 }
 0xcee   :  { %1930 = vst [vmem:[#allocation2 + $0x50] sm:$0xff] %v1922_v50 }
 0xcef   :  { %1931 = vst [vmem:[#allocation2 + $0x58] sm:$0xff] %v1923_v61 }
 0xcf0   :  { %1946 = dma.vmem_to_hbm [thread:$0]  %s1939_s16, 2048, %s1941_s22, [#allocation3], %s2144_s0, %s2144_s0, %s2145_s23  }
 0xcf1   :  { %2129 = dma.done.wait [#allocation3], 2048  }
 0xcf2   :  { %2130 = vsyncadd [#allocation3], 4294965248 }
 0xcf3   :  { %1951 = vsyncpa [#allocation3], 1 }

</bundles_post_ra>
